<compile_context>
chip_gen: v6e
topology: v6e:2x2x1
jax: 0.10.0
libtpu: 0.0.40
codegen_flags: <defaults>
</compile_context>

<pallas_src>
import functools

import jax
import jax.numpy as jnp
from jax import lax
from jax.experimental import pallas as pl
from jax.experimental.pallas import tpu as pltpu

# ----------------------------- configuration --------------------------------
DIM = 8                            # channels (`dim`)
HEADS = 4
DIM_HEAD = 32
NUM_MEM_KV = 4
HIDDEN = HEADS * DIM_HEAD          # 128
H = W = 8
N = H * W                          # 64 spatial positions
EPS = 1e-12                        # F.normalize eps
RMS_SCALE = DIM ** 0.5             # RMSNorm scale
ATTN_SCALE = DIM_HEAD ** -0.5      # Attend default scale


# ------------------------------- kernel --------------------------------------
def attention_kernel(x_ref, wq_t_ref, wkv_ref, memk_ref, memv_ref,
                     wout_ref, bout_ref, o_ref, *, tb):
    """Processes `tb` batch elements per grid step, all in channel-major layout.

    x_ref    : (TB, C, N)          input (channels on sublanes, N on lanes)
    wq_t_ref : (C, HIDDEN)         q projection, pre-transposed; g*sqrt(dim) and
                                   attn scale folded in
    wkv_ref  : (2*HIDDEN, C)       k & v projections; g*sqrt(dim) folded in
    memk_ref : (HEADS, DH, M)      memory keys   (channel-major per head)
    memv_ref : (HEADS, DH, M)      memory values (channel-major per head)
    wout_ref : (HEADS, C, DH)      output projection, split per head
    bout_ref : (C, 1)              output projection bias
    o_ref    : (TB, C, N)          output
    """
    n = x_ref.shape[-1]

    # Identity matrix used to flip (C, N) -> (N, C) on the MXU with a plain
    # trans_b matmul (avoids transposed-LHS matmuls / vector transposes).
    eye_n = (lax.broadcasted_iota(jnp.int32, (n, n), 0) ==
             lax.broadcasted_iota(jnp.int32, (n, n), 1)).astype(jnp.float32)

    wq_t = wq_t_ref[...]           # (C, HIDDEN)
    wkv = wkv_ref[...]             # (2*HIDDEN, C)
    bias = bout_ref[...]           # (C, 1)

    for bb in range(tb):                                   # static, unrolled
        xb = x_ref[bb]                                     # (C, N)

        # --- RMSNorm (gain & sqrt(dim) are folded into the weights) ---
        ss = jnp.sum(xb * xb, axis=0, keepdims=True)       # (1, N)
        inv_norm = 1.0 / jnp.maximum(jnp.sqrt(ss), EPS)
        yb = xb * inv_norm                                 # (C, N)

        # row-major copy of the normalized activations (for the q side)
        yb_t = lax.dot_general(eye_n, yb, (((1,), (1,)), ((), ())),
                               preferred_element_type=jnp.float32)   # (N, C)

        # --- projections (1x1 convs) ---
        q_t = jnp.dot(yb_t, wq_t, preferred_element_type=jnp.float32)   # (N, HIDDEN)
        kv = jnp.dot(wkv, yb, preferred_element_type=jnp.float32)       # (2*HIDDEN, N)

        o_acc = None
        for hh in range(HEADS):                            # static, unrolled
            q_h = q_t[:, hh * DIM_HEAD:(hh + 1) * DIM_HEAD]            # (N, DH)
            k_h = kv[hh * DIM_HEAD:(hh + 1) * DIM_HEAD, :]             # (DH, N)
            v_h = kv[HIDDEN + hh * DIM_HEAD:HIDDEN + (hh + 1) * DIM_HEAD, :]
            mk_h = memk_ref[hh]                                        # (DH, M)
            mv_h = memv_ref[hh]                                        # (DH, M)

            # scores: memory kv and spatial kv handled separately (no concat)
            sim_sp = jnp.dot(q_h, k_h, preferred_element_type=jnp.float32)    # (N, N)
            sim_mem = jnp.dot(q_h, mk_h, preferred_element_type=jnp.float32)  # (N, M)

            m = jnp.maximum(jnp.max(sim_sp, axis=-1, keepdims=True),
                            jnp.max(sim_mem, axis=-1, keepdims=True))          # (N, 1)
            p_sp = jnp.exp(sim_sp - m)
            p_mem = jnp.exp(sim_mem - m)
            inv_l = pl.reciprocal(
                jnp.sum(p_sp, axis=-1, keepdims=True)
                + jnp.sum(p_mem, axis=-1, keepdims=True),
                approx=True)                                                    # (N, 1)
            a_sp = p_sp * inv_l
            a_mem = p_mem * inv_l

            # attention output, kept channel-major: (DH, N)
            out_h = (lax.dot_general(v_h, a_sp, (((1,), (1,)), ((), ())),
                                     preferred_element_type=jnp.float32)
                     + lax.dot_general(mv_h, a_mem, (((1,), (1,)), ((), ())),
                                       preferred_element_type=jnp.float32))

            # accumulate the output projection per head (no head concat)
            contrib = jnp.dot(wout_ref[hh], out_h,
                              preferred_element_type=jnp.float32)               # (C, N)
            o_acc = contrib if o_acc is None else o_acc + contrib

        o_ref[bb] = (o_acc + bias).astype(o_ref.dtype)


# ------------------------------ wrapper ---------------------------------------
@jax.jit
def attention_pallas(x_nchw, g, w_qkv, mem_kv, w_out, b_out):
    b, c, h, w = x_nchw.shape
    n = h * w

    # NCHW -> (B, C, N): a pure reshape, no HBM transpose.
    x_seq = x_nchw.reshape(b, c, n)

    # Fold RMSNorm gain * sqrt(dim) into the qkv weight columns, and the
    # attention scale into the q rows (all tiny parameter-side ops).
    gvec = g.reshape(-1).astype(w_qkv.dtype)
    col_scale = (gvec * RMS_SCALE)[None, :]                           # (1, C)
    wq_t = (w_qkv[:HIDDEN] * col_scale * ATTN_SCALE).T                # (C, HIDDEN)
    wkv = w_qkv[HIDDEN:] * col_scale                                  # (2*HIDDEN, C)

    memk3 = jnp.transpose(mem_kv[0], (0, 2, 1))                       # (HEADS, DH, M)
    memv3 = jnp.transpose(mem_kv[1], (0, 2, 1))                       # (HEADS, DH, M)
    wout3 = jnp.transpose(w_out.reshape(c, HEADS, DIM_HEAD), (1, 0, 2))  # (HEADS, C, DH)
    bout2 = b_out.reshape(c, 1)

    # Batch tile: amortize per-grid-step overhead, but keep >= 2 parallel grid
    # steps so both v7x TensorCores get work.
    if b >= 16:
        tb = 8
    elif b >= 2:
        tb = b // 2
    else:
        tb = 1
    num_steps = -(-b // tb)
    b_pad = num_steps * tb
    if b_pad != b:
        x_seq = jnp.concatenate(
            [x_seq, jnp.zeros((b_pad - b, c, n), x_seq.dtype)], axis=0)

    out_seq = pl.pallas_call(
        functools.partial(attention_kernel, tb=tb),
        out_shape=jax.ShapeDtypeStruct((b_pad, c, n), x_nchw.dtype),
        grid_spec=pltpu.PrefetchScalarGridSpec(
            num_scalar_prefetch=0,
            grid=(num_steps,),
            in_specs=[
                pl.BlockSpec((tb, c, n), lambda i: (i, 0, 0)),
                pl.BlockSpec((c, HIDDEN), lambda i: (0, 0)),
                pl.BlockSpec((2 * HIDDEN, c), lambda i: (0, 0)),
                pl.BlockSpec((HEADS, DIM_HEAD, NUM_MEM_KV), lambda i: (0, 0, 0)),
                pl.BlockSpec((HEADS, DIM_HEAD, NUM_MEM_KV), lambda i: (0, 0, 0)),
                pl.BlockSpec((HEADS, c, DIM_HEAD), lambda i: (0, 0, 0)),
                pl.BlockSpec((c, 1), lambda i: (0, 0)),
            ],
            out_specs=pl.BlockSpec((tb, c, n), lambda i: (i, 0, 0)),
        ),
        compiler_params=pltpu.CompilerParams(
            dimension_semantics=("parallel",)),
    )(x_seq, wq_t, wkv, memk3, memv3, wout3, bout2)

    # (B, C, N) -> NCHW: again a pure reshape.
    return out_seq[:b].reshape(b, c, h, w)


# --------------------------- plain-JAX reference -------------------------------
def attention_reference(x_nchw, g, w_qkv, mem_kv, w_out, b_out):
    b, c, h, w = x_nchw.shape
    norm = jnp.sqrt(jnp.sum(x_nchw ** 2, axis=1, keepdims=True))
    xn = x_nchw / jnp.maximum(norm, EPS) * g.reshape(1, c, 1, 1) * RMS_SCALE
    qkv = jnp.einsum('oc,bcxy->boxy', w_qkv, xn)
    q, k, v = jnp.split(qkv, 3, axis=1)

    def to_heads(t):
        return t.reshape(b, HEADS, DIM_HEAD, h * w).transpose(0, 1, 3, 2)

    q, k, v = map(to_heads, (q, k, v))
    mk = jnp.broadcast_to(mem_kv[0], (b, HEADS, NUM_MEM_KV, DIM_HEAD))
    mv = jnp.broadcast_to(mem_kv[1], (b, HEADS, NUM_MEM_KV, DIM_HEAD))
    k = jnp.concatenate([mk, k], axis=2)
    v = jnp.concatenate([mv, v], axis=2)
    sim = jnp.einsum('bhnd,bhmd->bhnm', q, k) * ATTN_SCALE
    attn = jax.nn.softmax(sim, axis=-1)
    out = jnp.einsum('bhnm,bhmd->bhnd', attn, v)
    out = out.transpose(0, 1, 3, 2).reshape(b, HEADS * DIM_HEAD, h, w)
    return jnp.einsum('oc,bcxy->boxy', w_out, out) + b_out.reshape(1, c, 1, 1)


# --------------------------------- main ----------------------------------------
if __name__ == "__main__":
    key = jax.random.PRNGKey(0)
    k_x, k_g, k_qkv, k_mem, k_wo, k_bo = jax.random.split(key, 6)

    B = 2
    x = jax.random.normal(k_x, (B, DIM, H, W), dtype=jnp.float32)

    # deterministic parameter init (shapes match nn module __init__)
    g = 1.0 + 0.1 * jax.random.normal(k_g, (DIM,), jnp.float32)               # RMSNorm.g
    w_qkv = jax.random.normal(k_qkv, (3 * HIDDEN, DIM), jnp.float32) * 0.1    # Conv2d 1x1, no bias
    mem_kv = jax.random.normal(k_mem, (2, HEADS, NUM_MEM_KV, DIM_HEAD), jnp.float32)
    w_out = jax.random.normal(k_wo, (DIM, HIDDEN), jnp.float32) * 0.1         # Conv2d 1x1
    b_out = jax.random.normal(k_bo, (DIM,), jnp.float32) * 0.1

    out = attention_pallas(x, g, w_qkv, mem_kv, w_out, b_out)
    out = jax.block_until_ready(out)

    ref = attention_reference(x, g, w_qkv, mem_kv, w_out, b_out)
    assert out.shape == (B, DIM, H, W)
    # Tolerance is slightly relaxed (vs 1e-4) because the softmax denominator
    # uses the approximate EUP reciprocal (pl.reciprocal(..., approx=True)).
    assert jnp.allclose(out, ref, atol=5e-3, rtol=5e-3), \
        f"max abs err = {jnp.max(jnp.abs(out - ref))}"

    print("KERNEL_OK")
</pallas_src>

<mosaic_0001>
module attributes {stable_mosaic.version = 11 : i64} {
  func.func @attention_kernel(%arg0: i32, %arg1: memref<1x8x64xf32, #tpu.memory_space<vmem>>, %arg2: memref<8x128xf32, #tpu.memory_space<vmem>>, %arg3: memref<256x8xf32, #tpu.memory_space<vmem>>, %arg4: memref<4x32x4xf32, #tpu.memory_space<vmem>>, %arg5: memref<4x32x4xf32, #tpu.memory_space<vmem>>, %arg6: memref<4x8x32xf32, #tpu.memory_space<vmem>>, %arg7: memref<8x1xf32, #tpu.memory_space<vmem>>, %arg8: memref<1x8x64xf32, #tpu.memory_space<vmem>>) attributes {dimension_semantics = [#tpu.dimension_semantics<parallel>], iteration_bounds = array<i64: 2>, scalar_prefetch = 0 : i64, scratch_operands = 0 : i64, tpu.core_type = #tpu.core_type<tc>, window_params = [{transform_indices = @transform_0, window_bounds = array<i64: 1, 8, 64>}, {pipeline_mode = #tpu.pipeline_mode<synchronous>, transform_indices = @transform_1, window_bounds = array<i64: 8, 128>}, {pipeline_mode = #tpu.pipeline_mode<synchronous>, transform_indices = @transform_2, window_bounds = array<i64: 256, 8>}, {pipeline_mode = #tpu.pipeline_mode<synchronous>, transform_indices = @transform_3, window_bounds = array<i64: 4, 32, 4>}, {pipeline_mode = #tpu.pipeline_mode<synchronous>, transform_indices = @transform_4, window_bounds = array<i64: 4, 32, 4>}, {pipeline_mode = #tpu.pipeline_mode<synchronous>, transform_indices = @transform_5, window_bounds = array<i64: 4, 8, 32>}, {pipeline_mode = #tpu.pipeline_mode<synchronous>, transform_indices = @transform_6, window_bounds = array<i64: 8, 1>}, {transform_indices = @transform_7, window_bounds = array<i64: 1, 8, 64>}]} {
    %0 = tpu.iota {dimensions = array<i32: 0>} : vector<64x64xi32>
    %1 = tpu.iota {dimensions = array<i32: 1>} : vector<64x64xi32>
    %2 = arith.cmpi eq, %0, %1 : vector<64x64xi32>
    %3 = arith.extui %2 : vector<64x64xi1> to vector<64x64xi32>
    %4 = arith.sitofp %3 : vector<64x64xi32> to vector<64x64xf32>
    %c0 = arith.constant 0 : index
    %c0_0 = arith.constant 0 : index
    %5 = vector.load %arg2[%c0, %c0_0] : memref<8x128xf32, #tpu.memory_space<vmem>>, vector<8x128xf32>
    %c0_1 = arith.constant 0 : index
    %c0_2 = arith.constant 0 : index
    %6 = vector.load %arg3[%c0_1, %c0_2] : memref<256x8xf32, #tpu.memory_space<vmem>>, vector<256x8xf32>
    %c0_3 = arith.constant 0 : index
    %c0_4 = arith.constant 0 : index
    %7 = vector.load %arg7[%c0_3, %c0_4] : memref<8x1xf32, #tpu.memory_space<vmem>>, vector<8x1xf32>
    %c0_5 = arith.constant 0 : index
    %c0_6 = arith.constant 0 : index
    %c0_7 = arith.constant 0 : index
    %8 = vector.load %arg1[%c0_5, %c0_6, %c0_7] : memref<1x8x64xf32, #tpu.memory_space<vmem>>, vector<1x8x64xf32>
    %9 = vector.shape_cast %8 : vector<1x8x64xf32> to vector<8x64xf32>
    %10 = arith.mulf %9, %9 : vector<8x64xf32>
    %cst = arith.constant dense<0.000000e+00> : vector<64xf32>
    %11 = vector.multi_reduction <add>, %10, %cst [0] : vector<8x64xf32> to vector<64xf32>
    %12 = vector.shape_cast %11 : vector<64xf32> to vector<1x64xf32>
    %13 = math.sqrt %12 : vector<1x64xf32>
    %cst_8 = arith.constant 9.99999996E-13 : f32
    %14 = vector.broadcast %cst_8 : f32 to vector<1x64xf32>
    %15 = arith.maximumf %13, %14 : vector<1x64xf32>
    %cst_9 = arith.constant 1.000000e+00 : f32
    %16 = vector.broadcast %cst_9 : f32 to vector<1x64xf32>
    %17 = arith.divf %16, %15 : vector<1x64xf32>
    %18 = vector.broadcast %17 : vector<1x64xf32> to vector<8x64xf32>
    %19 = arith.mulf %9, %18 : vector<8x64xf32>
    %cst_10 = arith.constant dense<0.000000e+00> : vector<64x8xf32>
    %20 = tpu.matmul %4, %19, %cst_10 {dimension_numbers = #tpu.dot_dimension_numbers<[1], [1], [0], [0], [0, 0, 1, 0], [], []>} : vector<64x64xf32>, vector<8x64xf32>, vector<64x8xf32> -> vector<64x8xf32>
    %cst_11 = arith.constant dense<0.000000e+00> : vector<64x128xf32>
    %21 = tpu.matmul %20, %5, %cst_11 {dimension_numbers = #tpu.dot_dimension_numbers<[1], [0], [0], [1], [0, 0, 1, 1], [], []>} : vector<64x8xf32>, vector<8x128xf32>, vector<64x128xf32> -> vector<64x128xf32>
    %cst_12 = arith.constant dense<0.000000e+00> : vector<256x64xf32>
    %22 = tpu.matmul %6, %19, %cst_12 {dimension_numbers = #tpu.dot_dimension_numbers<[1], [0], [0], [1], [0, 0, 1, 1], [], []>} : vector<256x8xf32>, vector<8x64xf32>, vector<256x64xf32> -> vector<256x64xf32>
    %23 = vector.extract_strided_slice %21 {offsets = [0, 0], sizes = [64, 32], strides = [1, 1]} : vector<64x128xf32> to vector<64x32xf32>
    %24 = vector.extract_strided_slice %22 {offsets = [0, 0], sizes = [32, 64], strides = [1, 1]} : vector<256x64xf32> to vector<32x64xf32>
    %25 = vector.extract_strided_slice %22 {offsets = [128, 0], sizes = [32, 64], strides = [1, 1]} : vector<256x64xf32> to vector<32x64xf32>
    %c0_13 = arith.constant 0 : index
    %c0_14 = arith.constant 0 : index
    %c0_15 = arith.constant 0 : index
    %26 = vector.load %arg4[%c0_13, %c0_14, %c0_15] : memref<4x32x4xf32, #tpu.memory_space<vmem>>, vector<1x32x4xf32>
    %27 = vector.shape_cast %26 : vector<1x32x4xf32> to vector<32x4xf32>
    %c0_16 = arith.constant 0 : index
    %c0_17 = arith.constant 0 : index
    %c0_18 = arith.constant 0 : index
    %28 = vector.load %arg5[%c0_16, %c0_17, %c0_18] : memref<4x32x4xf32, #tpu.memory_space<vmem>>, vector<1x32x4xf32>
    %29 = vector.shape_cast %28 : vector<1x32x4xf32> to vector<32x4xf32>
    %cst_19 = arith.constant dense<0.000000e+00> : vector<64x64xf32>
    %30 = tpu.matmul %23, %24, %cst_19 {dimension_numbers = #tpu.dot_dimension_numbers<[1], [0], [0], [1], [0, 0, 1, 1], [], []>} : vector<64x32xf32>, vector<32x64xf32>, vector<64x64xf32> -> vector<64x64xf32>
    %cst_20 = arith.constant dense<0.000000e+00> : vector<64x4xf32>
    %31 = tpu.matmul %23, %27, %cst_20 {dimension_numbers = #tpu.dot_dimension_numbers<[1], [0], [0], [1], [0, 0, 1, 1], [], []>} : vector<64x32xf32>, vector<32x4xf32>, vector<64x4xf32> -> vector<64x4xf32>
    %cst_21 = arith.constant dense<0xFF800000> : vector<64xf32>
    %32 = vector.multi_reduction <maximumf>, %30, %cst_21 [1] : vector<64x64xf32> to vector<64xf32>
    %33 = vector.shape_cast %32 : vector<64xf32> to vector<64x1xf32>
    %cst_22 = arith.constant dense<0xFF800000> : vector<64xf32>
    %34 = vector.multi_reduction <maximumf>, %31, %cst_22 [1] : vector<64x4xf32> to vector<64xf32>
    %35 = vector.shape_cast %34 : vector<64xf32> to vector<64x1xf32>
    %36 = arith.maximumf %33, %35 : vector<64x1xf32>
    %37 = vector.broadcast %36 : vector<64x1xf32> to vector<64x64xf32>
    %38 = arith.subf %30, %37 : vector<64x64xf32>
    %39 = math.exp %38 : vector<64x64xf32>
    %40 = vector.broadcast %36 : vector<64x1xf32> to vector<64x4xf32>
    %41 = arith.subf %31, %40 : vector<64x4xf32>
    %42 = math.exp %41 : vector<64x4xf32>
    %cst_23 = arith.constant dense<0.000000e+00> : vector<64xf32>
    %43 = vector.multi_reduction <add>, %39, %cst_23 [1] : vector<64x64xf32> to vector<64xf32>
    %44 = vector.shape_cast %43 : vector<64xf32> to vector<64x1xf32>
    %cst_24 = arith.constant dense<0.000000e+00> : vector<64xf32>
    %45 = vector.multi_reduction <add>, %42, %cst_24 [1] : vector<64x4xf32> to vector<64xf32>
    %46 = vector.shape_cast %45 : vector<64xf32> to vector<64x1xf32>
    %47 = arith.addf %44, %46 : vector<64x1xf32>
    %48 = tpu.reciprocal %47 {approx = true} : vector<64x1xf32> -> vector<64x1xf32>
    %49 = vector.broadcast %48 : vector<64x1xf32> to vector<64x64xf32>
    %50 = arith.mulf %39, %49 : vector<64x64xf32>
    %51 = vector.broadcast %48 : vector<64x1xf32> to vector<64x4xf32>
    %52 = arith.mulf %42, %51 : vector<64x4xf32>
    %cst_25 = arith.constant dense<0.000000e+00> : vector<32x64xf32>
    %53 = tpu.matmul %25, %50, %cst_25 {dimension_numbers = #tpu.dot_dimension_numbers<[1], [1], [0], [0], [0, 0, 1, 0], [], []>} : vector<32x64xf32>, vector<64x64xf32>, vector<32x64xf32> -> vector<32x64xf32>
    %cst_26 = arith.constant dense<0.000000e+00> : vector<32x64xf32>
    %54 = tpu.matmul %29, %52, %cst_26 {dimension_numbers = #tpu.dot_dimension_numbers<[1], [1], [0], [0], [0, 0, 1, 0], [], []>} : vector<32x4xf32>, vector<64x4xf32>, vector<32x64xf32> -> vector<32x64xf32>
    %55 = arith.addf %53, %54 : vector<32x64xf32>
    %c0_27 = arith.constant 0 : index
    %c0_28 = arith.constant 0 : index
    %c0_29 = arith.constant 0 : index
    %56 = vector.load %arg6[%c0_27, %c0_28, %c0_29] : memref<4x8x32xf32, #tpu.memory_space<vmem>>, vector<1x8x32xf32>
    %57 = vector.shape_cast %56 : vector<1x8x32xf32> to vector<8x32xf32>
    %cst_30 = arith.constant dense<0.000000e+00> : vector<8x64xf32>
    %58 = tpu.matmul %57, %55, %cst_30 {dimension_numbers = #tpu.dot_dimension_numbers<[1], [0], [0], [1], [0, 0, 1, 1], [], []>} : vector<8x32xf32>, vector<32x64xf32>, vector<8x64xf32> -> vector<8x64xf32>
    %59 = vector.extract_strided_slice %21 {offsets = [0, 32], sizes = [64, 32], strides = [1, 1]} : vector<64x128xf32> to vector<64x32xf32>
    %60 = vector.extract_strided_slice %22 {offsets = [32, 0], sizes = [32, 64], strides = [1, 1]} : vector<256x64xf32> to vector<32x64xf32>
    %61 = vector.extract_strided_slice %22 {offsets = [160, 0], sizes = [32, 64], strides = [1, 1]} : vector<256x64xf32> to vector<32x64xf32>
    %c1 = arith.constant 1 : index
    %c0_31 = arith.constant 0 : index
    %c0_32 = arith.constant 0 : index
    %62 = vector.load %arg4[%c1, %c0_31, %c0_32] : memref<4x32x4xf32, #tpu.memory_space<vmem>>, vector<1x32x4xf32>
    %63 = vector.shape_cast %62 : vector<1x32x4xf32> to vector<32x4xf32>
    %c1_33 = arith.constant 1 : index
    %c0_34 = arith.constant 0 : index
    %c0_35 = arith.constant 0 : index
    %64 = vector.load %arg5[%c1_33, %c0_34, %c0_35] : memref<4x32x4xf32, #tpu.memory_space<vmem>>, vector<1x32x4xf32>
    %65 = vector.shape_cast %64 : vector<1x32x4xf32> to vector<32x4xf32>
    %cst_36 = arith.constant dense<0.000000e+00> : vector<64x64xf32>
    %66 = tpu.matmul %59, %60, %cst_36 {dimension_numbers = #tpu.dot_dimension_numbers<[1], [0], [0], [1], [0, 0, 1, 1], [], []>} : vector<64x32xf32>, vector<32x64xf32>, vector<64x64xf32> -> vector<64x64xf32>
    %cst_37 = arith.constant dense<0.000000e+00> : vector<64x4xf32>
    %67 = tpu.matmul %59, %63, %cst_37 {dimension_numbers = #tpu.dot_dimension_numbers<[1], [0], [0], [1], [0, 0, 1, 1], [], []>} : vector<64x32xf32>, vector<32x4xf32>, vector<64x4xf32> -> vector<64x4xf32>
    %cst_38 = arith.constant dense<0xFF800000> : vector<64xf32>
    %68 = vector.multi_reduction <maximumf>, %66, %cst_38 [1] : vector<64x64xf32> to vector<64xf32>
    %69 = vector.shape_cast %68 : vector<64xf32> to vector<64x1xf32>
    %cst_39 = arith.constant dense<0xFF800000> : vector<64xf32>
    %70 = vector.multi_reduction <maximumf>, %67, %cst_39 [1] : vector<64x4xf32> to vector<64xf32>
    %71 = vector.shape_cast %70 : vector<64xf32> to vector<64x1xf32>
    %72 = arith.maximumf %69, %71 : vector<64x1xf32>
    %73 = vector.broadcast %72 : vector<64x1xf32> to vector<64x64xf32>
    %74 = arith.subf %66, %73 : vector<64x64xf32>
    %75 = math.exp %74 : vector<64x64xf32>
    %76 = vector.broadcast %72 : vector<64x1xf32> to vector<64x4xf32>
    %77 = arith.subf %67, %76 : vector<64x4xf32>
    %78 = math.exp %77 : vector<64x4xf32>
    %cst_40 = arith.constant dense<0.000000e+00> : vector<64xf32>
    %79 = vector.multi_reduction <add>, %75, %cst_40 [1] : vector<64x64xf32> to vector<64xf32>
    %80 = vector.shape_cast %79 : vector<64xf32> to vector<64x1xf32>
    %cst_41 = arith.constant dense<0.000000e+00> : vector<64xf32>
    %81 = vector.multi_reduction <add>, %78, %cst_41 [1] : vector<64x4xf32> to vector<64xf32>
    %82 = vector.shape_cast %81 : vector<64xf32> to vector<64x1xf32>
    %83 = arith.addf %80, %82 : vector<64x1xf32>
    %84 = tpu.reciprocal %83 {approx = true} : vector<64x1xf32> -> vector<64x1xf32>
    %85 = vector.broadcast %84 : vector<64x1xf32> to vector<64x64xf32>
    %86 = arith.mulf %75, %85 : vector<64x64xf32>
    %87 = vector.broadcast %84 : vector<64x1xf32> to vector<64x4xf32>
    %88 = arith.mulf %78, %87 : vector<64x4xf32>
    %cst_42 = arith.constant dense<0.000000e+00> : vector<32x64xf32>
    %89 = tpu.matmul %61, %86, %cst_42 {dimension_numbers = #tpu.dot_dimension_numbers<[1], [1], [0], [0], [0, 0, 1, 0], [], []>} : vector<32x64xf32>, vector<64x64xf32>, vector<32x64xf32> -> vector<32x64xf32>
    %cst_43 = arith.constant dense<0.000000e+00> : vector<32x64xf32>
    %90 = tpu.matmul %65, %88, %cst_43 {dimension_numbers = #tpu.dot_dimension_numbers<[1], [1], [0], [0], [0, 0, 1, 0], [], []>} : vector<32x4xf32>, vector<64x4xf32>, vector<32x64xf32> -> vector<32x64xf32>
    %91 = arith.addf %89, %90 : vector<32x64xf32>
    %c1_44 = arith.constant 1 : index
    %c0_45 = arith.constant 0 : index
    %c0_46 = arith.constant 0 : index
    %92 = vector.load %arg6[%c1_44, %c0_45, %c0_46] : memref<4x8x32xf32, #tpu.memory_space<vmem>>, vector<1x8x32xf32>
    %93 = vector.shape_cast %92 : vector<1x8x32xf32> to vector<8x32xf32>
    %cst_47 = arith.constant dense<0.000000e+00> : vector<8x64xf32>
    %94 = tpu.matmul %93, %91, %cst_47 {dimension_numbers = #tpu.dot_dimension_numbers<[1], [0], [0], [1], [0, 0, 1, 1], [], []>} : vector<8x32xf32>, vector<32x64xf32>, vector<8x64xf32> -> vector<8x64xf32>
    %95 = arith.addf %58, %94 : vector<8x64xf32>
    %96 = vector.extract_strided_slice %21 {offsets = [0, 64], sizes = [64, 32], strides = [1, 1]} : vector<64x128xf32> to vector<64x32xf32>
    %97 = vector.extract_strided_slice %22 {offsets = [64, 0], sizes = [32, 64], strides = [1, 1]} : vector<256x64xf32> to vector<32x64xf32>
    %98 = vector.extract_strided_slice %22 {offsets = [192, 0], sizes = [32, 64], strides = [1, 1]} : vector<256x64xf32> to vector<32x64xf32>
    %c2 = arith.constant 2 : index
    %c0_48 = arith.constant 0 : index
    %c0_49 = arith.constant 0 : index
    %99 = vector.load %arg4[%c2, %c0_48, %c0_49] : memref<4x32x4xf32, #tpu.memory_space<vmem>>, vector<1x32x4xf32>
    %100 = vector.shape_cast %99 : vector<1x32x4xf32> to vector<32x4xf32>
    %c2_50 = arith.constant 2 : index
    %c0_51 = arith.constant 0 : index
    %c0_52 = arith.constant 0 : index
    %101 = vector.load %arg5[%c2_50, %c0_51, %c0_52] : memref<4x32x4xf32, #tpu.memory_space<vmem>>, vector<1x32x4xf32>
    %102 = vector.shape_cast %101 : vector<1x32x4xf32> to vector<32x4xf32>
    %cst_53 = arith.constant dense<0.000000e+00> : vector<64x64xf32>
    %103 = tpu.matmul %96, %97, %cst_53 {dimension_numbers = #tpu.dot_dimension_numbers<[1], [0], [0], [1], [0, 0, 1, 1], [], []>} : vector<64x32xf32>, vector<32x64xf32>, vector<64x64xf32> -> vector<64x64xf32>
    %cst_54 = arith.constant dense<0.000000e+00> : vector<64x4xf32>
    %104 = tpu.matmul %96, %100, %cst_54 {dimension_numbers = #tpu.dot_dimension_numbers<[1], [0], [0], [1], [0, 0, 1, 1], [], []>} : vector<64x32xf32>, vector<32x4xf32>, vector<64x4xf32> -> vector<64x4xf32>
    %cst_55 = arith.constant dense<0xFF800000> : vector<64xf32>
    %105 = vector.multi_reduction <maximumf>, %103, %cst_55 [1] : vector<64x64xf32> to vector<64xf32>
    %106 = vector.shape_cast %105 : vector<64xf32> to vector<64x1xf32>
    %cst_56 = arith.constant dense<0xFF800000> : vector<64xf32>
    %107 = vector.multi_reduction <maximumf>, %104, %cst_56 [1] : vector<64x4xf32> to vector<64xf32>
    %108 = vector.shape_cast %107 : vector<64xf32> to vector<64x1xf32>
    %109 = arith.maximumf %106, %108 : vector<64x1xf32>
    %110 = vector.broadcast %109 : vector<64x1xf32> to vector<64x64xf32>
    %111 = arith.subf %103, %110 : vector<64x64xf32>
    %112 = math.exp %111 : vector<64x64xf32>
    %113 = vector.broadcast %109 : vector<64x1xf32> to vector<64x4xf32>
    %114 = arith.subf %104, %113 : vector<64x4xf32>
    %115 = math.exp %114 : vector<64x4xf32>
    %cst_57 = arith.constant dense<0.000000e+00> : vector<64xf32>
    %116 = vector.multi_reduction <add>, %112, %cst_57 [1] : vector<64x64xf32> to vector<64xf32>
    %117 = vector.shape_cast %116 : vector<64xf32> to vector<64x1xf32>
    %cst_58 = arith.constant dense<0.000000e+00> : vector<64xf32>
    %118 = vector.multi_reduction <add>, %115, %cst_58 [1] : vector<64x4xf32> to vector<64xf32>
    %119 = vector.shape_cast %118 : vector<64xf32> to vector<64x1xf32>
    %120 = arith.addf %117, %119 : vector<64x1xf32>
    %121 = tpu.reciprocal %120 {approx = true} : vector<64x1xf32> -> vector<64x1xf32>
    %122 = vector.broadcast %121 : vector<64x1xf32> to vector<64x64xf32>
    %123 = arith.mulf %112, %122 : vector<64x64xf32>
    %124 = vector.broadcast %121 : vector<64x1xf32> to vector<64x4xf32>
    %125 = arith.mulf %115, %124 : vector<64x4xf32>
    %cst_59 = arith.constant dense<0.000000e+00> : vector<32x64xf32>
    %126 = tpu.matmul %98, %123, %cst_59 {dimension_numbers = #tpu.dot_dimension_numbers<[1], [1], [0], [0], [0, 0, 1, 0], [], []>} : vector<32x64xf32>, vector<64x64xf32>, vector<32x64xf32> -> vector<32x64xf32>
    %cst_60 = arith.constant dense<0.000000e+00> : vector<32x64xf32>
    %127 = tpu.matmul %102, %125, %cst_60 {dimension_numbers = #tpu.dot_dimension_numbers<[1], [1], [0], [0], [0, 0, 1, 0], [], []>} : vector<32x4xf32>, vector<64x4xf32>, vector<32x64xf32> -> vector<32x64xf32>
    %128 = arith.addf %126, %127 : vector<32x64xf32>
    %c2_61 = arith.constant 2 : index
    %c0_62 = arith.constant 0 : index
    %c0_63 = arith.constant 0 : index
    %129 = vector.load %arg6[%c2_61, %c0_62, %c0_63] : memref<4x8x32xf32, #tpu.memory_space<vmem>>, vector<1x8x32xf32>
    %130 = vector.shape_cast %129 : vector<1x8x32xf32> to vector<8x32xf32>
    %cst_64 = arith.constant dense<0.000000e+00> : vector<8x64xf32>
    %131 = tpu.matmul %130, %128, %cst_64 {dimension_numbers = #tpu.dot_dimension_numbers<[1], [0], [0], [1], [0, 0, 1, 1], [], []>} : vector<8x32xf32>, vector<32x64xf32>, vector<8x64xf32> -> vector<8x64xf32>
    %132 = arith.addf %95, %131 : vector<8x64xf32>
    %133 = vector.extract_strided_slice %21 {offsets = [0, 96], sizes = [64, 32], strides = [1, 1]} : vector<64x128xf32> to vector<64x32xf32>
    %134 = vector.extract_strided_slice %22 {offsets = [96, 0], sizes = [32, 64], strides = [1, 1]} : vector<256x64xf32> to vector<32x64xf32>
    %135 = vector.extract_strided_slice %22 {offsets = [224, 0], sizes = [32, 64], strides = [1, 1]} : vector<256x64xf32> to vector<32x64xf32>
    %c3 = arith.constant 3 : index
    %c0_65 = arith.constant 0 : index
    %c0_66 = arith.constant 0 : index
    %136 = vector.load %arg4[%c3, %c0_65, %c0_66] : memref<4x32x4xf32, #tpu.memory_space<vmem>>, vector<1x32x4xf32>
    %137 = vector.shape_cast %136 : vector<1x32x4xf32> to vector<32x4xf32>
    %c3_67 = arith.constant 3 : index
    %c0_68 = arith.constant 0 : index
    %c0_69 = arith.constant 0 : index
    %138 = vector.load %arg5[%c3_67, %c0_68, %c0_69] : memref<4x32x4xf32, #tpu.memory_space<vmem>>, vector<1x32x4xf32>
    %139 = vector.shape_cast %138 : vector<1x32x4xf32> to vector<32x4xf32>
    %cst_70 = arith.constant dense<0.000000e+00> : vector<64x64xf32>
    %140 = tpu.matmul %133, %134, %cst_70 {dimension_numbers = #tpu.dot_dimension_numbers<[1], [0], [0], [1], [0, 0, 1, 1], [], []>} : vector<64x32xf32>, vector<32x64xf32>, vector<64x64xf32> -> vector<64x64xf32>
    %cst_71 = arith.constant dense<0.000000e+00> : vector<64x4xf32>
    %141 = tpu.matmul %133, %137, %cst_71 {dimension_numbers = #tpu.dot_dimension_numbers<[1], [0], [0], [1], [0, 0, 1, 1], [], []>} : vector<64x32xf32>, vector<32x4xf32>, vector<64x4xf32> -> vector<64x4xf32>
    %cst_72 = arith.constant dense<0xFF800000> : vector<64xf32>
    %142 = vector.multi_reduction <maximumf>, %140, %cst_72 [1] : vector<64x64xf32> to vector<64xf32>
    %143 = vector.shape_cast %142 : vector<64xf32> to vector<64x1xf32>
    %cst_73 = arith.constant dense<0xFF800000> : vector<64xf32>
    %144 = vector.multi_reduction <maximumf>, %141, %cst_73 [1] : vector<64x4xf32> to vector<64xf32>
    %145 = vector.shape_cast %144 : vector<64xf32> to vector<64x1xf32>
    %146 = arith.maximumf %143, %145 : vector<64x1xf32>
    %147 = vector.broadcast %146 : vector<64x1xf32> to vector<64x64xf32>
    %148 = arith.subf %140, %147 : vector<64x64xf32>
    %149 = math.exp %148 : vector<64x64xf32>
    %150 = vector.broadcast %146 : vector<64x1xf32> to vector<64x4xf32>
    %151 = arith.subf %141, %150 : vector<64x4xf32>
    %152 = math.exp %151 : vector<64x4xf32>
    %cst_74 = arith.constant dense<0.000000e+00> : vector<64xf32>
    %153 = vector.multi_reduction <add>, %149, %cst_74 [1] : vector<64x64xf32> to vector<64xf32>
    %154 = vector.shape_cast %153 : vector<64xf32> to vector<64x1xf32>
    %cst_75 = arith.constant dense<0.000000e+00> : vector<64xf32>
    %155 = vector.multi_reduction <add>, %152, %cst_75 [1] : vector<64x4xf32> to vector<64xf32>
    %156 = vector.shape_cast %155 : vector<64xf32> to vector<64x1xf32>
    %157 = arith.addf %154, %156 : vector<64x1xf32>
    %158 = tpu.reciprocal %157 {approx = true} : vector<64x1xf32> -> vector<64x1xf32>
    %159 = vector.broadcast %158 : vector<64x1xf32> to vector<64x64xf32>
    %160 = arith.mulf %149, %159 : vector<64x64xf32>
    %161 = vector.broadcast %158 : vector<64x1xf32> to vector<64x4xf32>
    %162 = arith.mulf %152, %161 : vector<64x4xf32>
    %cst_76 = arith.constant dense<0.000000e+00> : vector<32x64xf32>
    %163 = tpu.matmul %135, %160, %cst_76 {dimension_numbers = #tpu.dot_dimension_numbers<[1], [1], [0], [0], [0, 0, 1, 0], [], []>} : vector<32x64xf32>, vector<64x64xf32>, vector<32x64xf32> -> vector<32x64xf32>
    %cst_77 = arith.constant dense<0.000000e+00> : vector<32x64xf32>
    %164 = tpu.matmul %139, %162, %cst_77 {dimension_numbers = #tpu.dot_dimension_numbers<[1], [1], [0], [0], [0, 0, 1, 0], [], []>} : vector<32x4xf32>, vector<64x4xf32>, vector<32x64xf32> -> vector<32x64xf32>
    %165 = arith.addf %163, %164 : vector<32x64xf32>
    %c3_78 = arith.constant 3 : index
    %c0_79 = arith.constant 0 : index
    %c0_80 = arith.constant 0 : index
    %166 = vector.load %arg6[%c3_78, %c0_79, %c0_80] : memref<4x8x32xf32, #tpu.memory_space<vmem>>, vector<1x8x32xf32>
    %167 = vector.shape_cast %166 : vector<1x8x32xf32> to vector<8x32xf32>
    %cst_81 = arith.constant dense<0.000000e+00> : vector<8x64xf32>
    %168 = tpu.matmul %167, %165, %cst_81 {dimension_numbers = #tpu.dot_dimension_numbers<[1], [0], [0], [1], [0, 0, 1, 1], [], []>} : vector<8x32xf32>, vector<32x64xf32>, vector<8x64xf32> -> vector<8x64xf32>
    %169 = arith.addf %132, %168 : vector<8x64xf32>
    %170 = vector.broadcast %7 : vector<8x1xf32> to vector<8x64xf32>
    %171 = arith.addf %169, %170 : vector<8x64xf32>
    %c0_82 = arith.constant 0 : index
    %c0_83 = arith.constant 0 : index
    %c0_84 = arith.constant 0 : index
    %172 = vector.load %arg8[%c0_82, %c0_83, %c0_84] : memref<1x8x64xf32, #tpu.memory_space<vmem>>, vector<1x8x64xf32>
    %173 = vector.shape_cast %172 : vector<1x8x64xf32> to vector<8x64xf32>
    %174 = vector.shape_cast %171 : vector<8x64xf32> to vector<1x8x64xf32>
    tpu.vector_store %arg8[%c0_82, %c0_83, %c0_84], %174 {strides = array<i32>} : memref<1x8x64xf32, #tpu.memory_space<vmem>>, vector<1x8x64xf32>,
    return
  }
  func.func @transform_0(%arg0: i32) -> (i32, i32, i32) {
    %c0_i32 = arith.constant 0 : i32
    %c0_i32_0 = arith.constant 0 : i32
    %c0_i32_1 = arith.constant 0 : i32
    return %arg0, %c0_i32, %c0_i32_0 : i32, i32, i32
  }
  func.func @transform_1(%arg0: i32) -> (i32, i32) {
    %c0_i32 = arith.constant 0 : i32
    %c0_i32_0 = arith.constant 0 : i32
    %c0_i32_1 = arith.constant 0 : i32
    return %c0_i32, %c0_i32_0 : i32, i32
  }
  func.func @transform_2(%arg0: i32) -> (i32, i32) {
    %c0_i32 = arith.constant 0 : i32
    %c0_i32_0 = arith.constant 0 : i32
    %c0_i32_1 = arith.constant 0 : i32
    return %c0_i32, %c0_i32_0 : i32, i32
  }
  func.func @transform_3(%arg0: i32) -> (i32, i32, i32) {
    %c0_i32 = arith.constant 0 : i32
    %c0_i32_0 = arith.constant 0 : i32
    %c0_i32_1 = arith.constant 0 : i32
    %c0_i32_2 = arith.constant 0 : i32
    return %c0_i32, %c0_i32_0, %c0_i32_1 : i32, i32, i32
  }
  func.func @transform_4(%arg0: i32) -> (i32, i32, i32) {
    %c0_i32 = arith.constant 0 : i32
    %c0_i32_0 = arith.constant 0 : i32
    %c0_i32_1 = arith.constant 0 : i32
    %c0_i32_2 = arith.constant 0 : i32
    return %c0_i32, %c0_i32_0, %c0_i32_1 : i32, i32, i32
  }
  func.func @transform_5(%arg0: i32) -> (i32, i32, i32) {
    %c0_i32 = arith.constant 0 : i32
    %c0_i32_0 = arith.constant 0 : i32
    %c0_i32_1 = arith.constant 0 : i32
    %c0_i32_2 = arith.constant 0 : i32
    return %c0_i32, %c0_i32_0, %c0_i32_1 : i32, i32, i32
  }
  func.func @transform_6(%arg0: i32) -> (i32, i32) {
    %c0_i32 = arith.constant 0 : i32
    %c0_i32_0 = arith.constant 0 : i32
    %c0_i32_1 = arith.constant 0 : i32
    return %c0_i32, %c0_i32_0 : i32, i32
  }
  func.func @transform_7(%arg0: i32) -> (i32, i32, i32) {
    %c0_i32 = arith.constant 0 : i32
    %c0_i32_0 = arith.constant 0 : i32
    %c0_i32_1 = arith.constant 0 : i32
    return %arg0, %c0_i32, %c0_i32_0 : i32, i32, i32
  }
}

</mosaic_0001>

<bundles_post_ra>
// kernel: attention_pallas.1
= control target key start
LH: loop header
LB: loop body
LE: loop exit
PB: predicated region body
PF: predicated region fallthrough
CT: control target
= control target key end

     0   :  { %s5255_s24 = smov 0   ;;  %s6601_s0 = inlined_call_operand.vmem [shape: f32[2,8,64], index: 0, kind: input, shape index: {}]   ;;  %s6602_s1 = inlined_call_operand.vmem [shape: f32[8,128], index: 1, kind: input, shape index: {}]   ;;  %s6603_s2 = inlined_call_operand.vmem [shape: f32[256,8], index: 2, kind: input, shape index: {}]   ;;  %s6604_s3 = inlined_call_operand.vmem [shape: f32[4,32,4], index: 3, kind: input, shape index: {}]   ;;  %s6605_s4 = inlined_call_operand.vmem [shape: f32[4,32,4], index: 4, kind: input, shape index: {}]   ;;  %s6606_s5 = inlined_call_operand.vmem [shape: f32[4,8,32], index: 5, kind: input, shape index: {}]   ;;  %s6607_s6 = inlined_call_operand.vmem [shape: f32[8,1], index: 6, kind: input, shape index: {}]   ;;  %s6608_s7 = inlined_call_operand.vmem [shape: f32[2,8,64], index: 7, kind: output, shape index: {}]  }
   0x1 LB: > { %s4012_s25 = sadd.s32 4294967295, %s5207_s24   ;;  %p4016_p0 = scmp.ge.s32.totalorder %s5207_s24, 1  ;;  %s5207_s24 = sphi %s5255_s24, %s17_s24  }
   0x2   : > { %p236_p1 = scmp.lt.s32.totalorder %s5207_s24, 3 }
   0x4   : > { %p237_p2 = pnand %p4016_p0, %p236_p1 }
   0x6   : > { %240 = sbr.rel (%p237_p2) target bundleno = 3576 (0xdf8), region = 48 }
   0xb   : > { %p266_p3 = scmp.lt.s32.totalorder %s4012_s25, 1  ;;  %v274_v0 = vlaneseq  ;;  %vm345_vm1 = vcmask 523264   ;;  %v6609_v3 = vmov 0.0   ;;  %v309_v36 = vld [vmem:[%s6602_s1] sm:$0xff]  ;;  %vm496_vm11 = vcmask 64512   ;;  %v311_v46 = vld [vmem:[%s6603_s2 + $0x8] sm:$0xff] }
   0xc   : > { %4546 = vmatprep.subr.mxu1 %v309_v36  ;;  %v310_v45 = vld [vmem:[%s6603_s2] sm:$0xff]  ;;  %v312_v47 = vld [vmem:[%s6603_s2 + $0x10] sm:$0xff]  ;;  %v313_v48 = vld [vmem:[%s6603_s2 + $0x18] sm:$0xff]  ;;  %vm955_vm12 = vcmask 261120   ;;  %vm1214_vm13 = vcmask 31744   ;;  %s5210_s9 = smov 96  }
   0xd   : > { %s6617_s25 = smov (!%p266_p3, %s4012_s25), 1  ;;  %v275_v1 = vshrl.u32 %v274_v0, 7  ;;  %v284_v2 = vand.u32 127, %v274_v0  ;;  %4547 = vmatpush3.msra.mxu1 %v309_v36  ;;  %v950_v61 = vld [vmem:[%s6604_s3 + $0x18] sm:$0xff]  ;;  %v949_v62 = vld [vmem:[%s6604_s3 + $0x10] sm:$0xff]  ;;  %v948_v63 = vld [vmem:[%s6604_s3 + $0x8] sm:$0xff] }
   0xe   : > { %s4017_s26 = sshll.u32 %s6617_s25, 3  ;;  %v947_v0 = vld [vmem:[%s6604_s3] sm:$0xff]  ;;  %s5211_s18 = smov 64   ;;  %vm5212_vm14 = vmmov 0  }
   0xf   : > { %vm285_vm0 = vcmp.eq.s32.totalorder %v275_v1, %v284_v2  ;;  %s269_s29 = scalar_lea.vmem %s6601_s0, %s4017_s26  ;;  %v281_v5 = vadd.s32 48, %v275_v1  ;;  %v282_v7 = vadd.s32 56, %v275_v1  ;;  %v276_v22 = vadd.s32 8, %v275_v1  ;;  %v322_v36 = vld [vmem:[%s6603_s2 + $0x60] sm:$0xff]  ;;  %s5213_s19 = smov 32  }
  0x10   : > { %v4019_v4 = vsel %vm285_vm0, 1.0, %v6609_v3  ;;  %v343_v6 = vld [vmem:[%s269_s29] sm:$0xff]  ;;  %v277_v23 = vadd.s32 16, %v275_v1  ;;  %v278_v26 = vadd.s32 24, %v275_v1  ;;  %v279_v27 = vadd.s32 32, %v275_v1  ;;  %s273_s12 = scalar_lea.vmem %s6608_s7, %s4017_s26 }
  0x11   : > { %4534 = vmatprep.mubr.msk.f32.mxu0 %vm345_vm1, %v4019_v4  ;;  %v344_v8 = vmul.f32 %v343_v6, %v343_v6  ;;  %vm291_vm2 = vcmp.eq.s32.totalorder %v281_v5, %v284_v2  ;;  %vm292_vm3 = vcmp.eq.s32.totalorder %v282_v7, %v284_v2  ;;  %vm286_vm6 = vcmp.eq.s32.totalorder %v276_v22, %v284_v2  ;;  %v317_v22 = vld [vmem:[%s6603_s2 + $0x38] sm:$0xff] }
  0x12   : > { %vm287_vm7 = vcmp.eq.s32.totalorder %v277_v23, %v284_v2  ;;  %v4020_v28 = vsel %vm286_vm6, 1.0, %v6609_v3  ;;  %vm288_vm8 = vcmp.eq.s32.totalorder %v278_v26, %v284_v2  ;;  %v280_v30 = vadd.s32 40, %v275_v1 }
  0x13   : > { %v346_v9 = vsel %vm345_vm1, %v344_v8, 0.0  ;;  %v4021_v29 = vsel %vm287_vm7, 1.0, %v6609_v3  ;;  %vm289_vm9 = vcmp.eq.s32.totalorder %v279_v27, %v284_v2  ;;  %v4022_v31 = vsel %vm288_vm8, 1.0, %v6609_v3  ;;  %v319_v27 = vld [vmem:[%s6603_s2 + $0x48] sm:$0xff] }
  0x14   : > { %v347_v10 = vrot.slane %v346_v9, 4  ;;  %v4023_v32 = vsel %vm289_vm9, 1.0, %v6609_v3  ;;  %vm290_vm10 = vcmp.eq.s32.totalorder %v280_v30, %v284_v2  ;;  %v4025_v34 = vsel %vm291_vm2, 1.0, %v6609_v3 }
  0x15   : > { %v4024_v33 = vsel %vm290_vm10, 1.0, %v6609_v3  ;;  %v4026_v35 = vsel %vm292_vm3, 1.0, %v6609_v3 }
  0x16   : > { %v348_v11 = vadd.f32 %v347_v10, %v346_v9 }
  0x18   : > { %v349_v12 = vrot.slane %v348_v11, 2 }
  0x1a   : > { %v350_v13 = vadd.f32 %v349_v12, %v348_v11 }
  0x1c   : > { %v351_v14 = vrot.slane %v350_v13, 1 }
  0x1e   : > { %v352_v15 = vadd.f32 %v351_v14, %v350_v13 }
  0x20   : > { %5005 = vrsqrt.f32 %v352_v15  ;;  %vm355_vm4 = vcmp.eq.f32.partialorder %v352_v15, inf  ;;  %v358_v17 = vand.u32 2147483648, %v352_v15  ;;  %vm357_vm5 = vcmp.eq.f32.partialorder %v352_v15, 0.0 }
  0x2d   : > { %v5006_v16 = vpop.eup %5005 }
  0x2e   : > { %v354_v18 = vmul.f32 %v5006_v16, %v352_v15 }
  0x30   : > { %v356_v19 = vsel %vm355_vm4, %v352_v15, %v354_v18  ;;  %v315_v18 = vld [vmem:[%s6603_s2 + $0x28] sm:$0xff] }
  0x31   : > { %v359_v20 = vsel %vm357_vm5, %v358_v17, %v356_v19  ;;  %v314_v17 = vld [vmem:[%s6603_s2 + $0x20] sm:$0xff]  ;;  %v316_v19 = vld [vmem:[%s6603_s2 + $0x30] sm:$0xff] }
  0x32   : > { %v360_v21 = vmax.f32 %v359_v20, 1e-12 }
  0x34   : > { %5007 = vrcp.f32 %v360_v21 }
  0x41   : > { %v5008_v24 = vpop.eup %5007 }
  0x42   : > { %v363_v25 = vmul.f32 %v5008_v24, %v343_v6  ;;  %v318_v24 = vld [vmem:[%s6603_s2 + $0x40] sm:$0xff] }
  0x44   : > { %4532 = vmatprep.subr.msk.mxu0 %vm345_vm1, %v363_v25  ;;  %4560 = vmatprep.subr.mxu1 %v363_v25 }
  0x45   : > { %4533 = vmatpush3.xpose.msk.msra.mxu0 %vm345_vm1, %v363_v25 }
  0x48   : > { %4535 = vmatmul.mubr.msk.f32.vlgmr.msra.gmra.mxu0 %vm345_vm1, %v4020_v28 }
  0x49   : > { %4537 = vmatprep.mubr.msk.f32.mxu0 %vm345_vm1, %v4021_v29 }
  0x4c   : > { %4538 = vmatmul.mubr.msk.f32.gmra.mxu0 %vm345_vm1, %v4022_v31 }
  0x4d   : > { %4540 = vmatprep.mubr.msk.f32.mxu0 %vm345_vm1, %v4023_v32  ;;  %v320_v32 = vld [vmem:[%s6603_s2 + $0x50] sm:$0xff] }
  0x50   : > { %4541 = vmatmul.mubr.msk.f32.gmra.mxu0 %vm345_vm1, %v4024_v33 }
  0x51   : > { %4543 = vmatprep.mubr.msk.f32.mxu0 %vm345_vm1, %v4025_v34  ;;  %v321_v34 = vld [vmem:[%s6603_s2 + $0x58] sm:$0xff] }
  0x54   : > { %4544 = vmatmul.mubr.msk.f32.gmra.mxu0 %vm345_vm1, %v4026_v35 }
 0x108   : > { %v4536_v37 = vpop.f32.mrf.mxu0 }
 0x10a   : > { %v457_v38 = vpop.f32.mrf.mxu0 }
 0x10b   : > { %4548 = vmatprep.mubr.msk.f32.mxu1 %vm496_vm11, %v457_v38  ;;  %v323_v38 = vld [vmem:[%s6603_s2 + $0x68] sm:$0xff] }
 0x10c   : > { %v4539_v39 = vpop.f32.mrf.mxu0  ;;  %4549 = vmatmul.mubr.msk.f32.vlgmr.msra.gmra.mxu1 %vm496_vm11, %v4536_v37 }
 0x10d   : > { %4561 = vmatpush3.msra.mxu1 %v363_v25 }
 0x10e   : > { %v467_v40 = vpop.f32.mrf.mxu0 }
 0x10f   : > { %4551 = vmatprep.mubr.msk.f32.mxu1 %vm496_vm11, %v467_v40  ;;  %v324_v40 = vld [vmem:[%s6603_s2 + $0x70] sm:$0xff] }
 0x110   : > { %v4542_v41 = vpop.f32.mrf.mxu0  ;;  %4552 = vmatmul.mubr.msk.f32.gmra.mxu1 %vm496_vm11, %v4539_v39 }
 0x112   : > { %v477_v42 = vpop.f32.mrf.mxu0 }
 0x113   : > { %4554 = vmatprep.mubr.msk.f32.mxu1 %vm496_vm11, %v477_v42  ;;  %v325_v42 = vld [vmem:[%s6603_s2 + $0x78] sm:$0xff] }
 0x114   : > { %v4545_v43 = vpop.f32.mrf.mxu0  ;;  %4555 = vmatmul.mubr.msk.f32.gmra.mxu1 %vm496_vm11, %v4542_v41 }
 0x116   : > { %v487_v44 = vpop.f32.mrf.mxu0 }
 0x117   : > { %4557 = vmatprep.mubr.msk.f32.mxu1 %vm496_vm11, %v487_v44  ;;  %v326_v44 = vld [vmem:[%s6603_s2 + $0x80] sm:$0xff] }
 0x118   : > { %4558 = vmatmul.mubr.msk.f32.gmra.mxu1 %vm496_vm11, %v4545_v43 }
 0x119   : > { %4562 = vmatprep.mubr.msk.f32.mxu1 %vm496_vm11, %v310_v45 }
 0x11c   : > { %4563 = vmatmul.mubr.msk.f32.vlgmr.msra.gmra.mxu1 %vm496_vm11, %v311_v46  ;;  %v327_v46 = vld [vmem:[%s6603_s2 + $0x88] sm:$0xff] }
 0x11d   : > { %4565 = vmatprep.mubr.msk.f32.mxu1 %vm496_vm11, %v312_v47 }
 0x120   : > { %4566 = vmatmul.mubr.msk.f32.gmra.mxu1 %vm496_vm11, %v313_v48  ;;  %v328_v48 = vld [vmem:[%s6603_s2 + $0x90] sm:$0xff] }
 0x121   : > { %4568 = vmatprep.mubr.msk.f32.mxu1 %vm496_vm11, %v314_v17 }
 0x124   : > { %4569 = vmatmul.mubr.msk.f32.gmra.mxu1 %vm496_vm11, %v315_v18 }
 0x125   : > { %4571 = vmatprep.mubr.msk.f32.mxu1 %vm496_vm11, %v316_v19 }
 0x128   : > { %4572 = vmatmul.mubr.msk.f32.gmra.mxu1 %vm496_vm11, %v317_v22 }
 0x129   : > { %4574 = vmatprep.mubr.msk.f32.mxu1 %vm496_vm11, %v318_v24 }
 0x12c   : > { %4575 = vmatmul.mubr.msk.f32.gmra.mxu1 %vm496_vm11, %v319_v27 }
 0x12d   : > { %4577 = vmatprep.mubr.msk.f32.mxu1 %vm496_vm11, %v320_v32 }
 0x130   : > { %4578 = vmatmul.mubr.msk.f32.gmra.mxu1 %vm496_vm11, %v321_v34 }
 0x131   : > { %4580 = vmatprep.mubr.msk.f32.mxu1 %vm496_vm11, %v322_v36 }
 0x134   : > { %4581 = vmatmul.mubr.msk.f32.gmra.mxu1 %vm496_vm11, %v323_v38 }
 0x135   : > { %4583 = vmatprep.mubr.msk.f32.mxu1 %vm496_vm11, %v324_v40 }
 0x138   : > { %4584 = vmatmul.mubr.msk.f32.gmra.mxu1 %vm496_vm11, %v325_v42 }
 0x139   : > { %4586 = vmatprep.mubr.msk.f32.mxu1 %vm496_vm11, %v326_v44 }
 0x13c   : > { %4587 = vmatmul.mubr.msk.f32.gmra.mxu1 %vm496_vm11, %v327_v46 }
 0x13d   : > { %4589 = vmatprep.mubr.msk.f32.mxu1 %vm496_vm11, %v328_v48 }
 0x1cc   : > { %v5319_v49 = vpop.f32.mrf.mxu1 }
 0x1ce   : > { %v5321_v50 = vpop.f32.mrf.mxu1 }
 0x1cf   : > { %4618 = vmatprep.mubr.msk.f32.mxu0 %vm955_vm12, %v5321_v50 }
 0x1d0   : > { %v5325_v51 = vpop.f32.mrf.mxu1 }
 0x1d2   : > { %v5327_v52 = vpop.f32.mrf.mxu1 }
 0x1d4   : > { %v5329_v53 = vpop.f32.mrf.mxu1 }
 0x1d6   : > { %v5331_v54 = vpop.f32.mrf.mxu1 }
 0x1d8   : > { %v5333_v55 = vpop.f32.mrf.mxu1 }
 0x1da   : > { %v5335_v56 = vpop.f32.mrf.mxu1 }
 0x1dc   : > { %v4564_v57 = vpop.f32.mrf.mxu1 }
 0x1de   : > { %v788_v58 = vpop.f32.mrf.mxu1 }
 0x1e0   : > { %v4567_v59 = vpop.f32.mrf.mxu1 }
 0x1e1   : > { %4610 = vmatprep.subr.mxu0 %v4567_v59 }
 0x1e2   : > { %v798_v60 = vpop.f32.mrf.mxu1  ;;  %4611 = vmatpush3.msra.mxu0 %v4567_v59 }
 0x1e3   : > { %4612 = vmatprep.subr.mxu0 %v798_v60 }
 0x1e4   : > { %4613 = vmatpush3.msra.mxu0 %v798_v60 }
 0x1e5   : > { %4614 = vmatprep.subr.mxu0 %v4564_v57 }
 0x1e6   : > { %4615 = vmatpush3.msra.mxu0 %v4564_v57  ;;  %v329_v57 = vld [vmem:[%s6603_s2 + $0x98] sm:$0xff] }
 0x1e7   : > { %4616 = vmatprep.subr.mxu0 %v788_v58  ;;  %4590 = vmatmul.mubr.msk.f32.gmra.mxu1 %vm496_vm11, %v329_v57 }
 0x1e8   : > { %4617 = vmatpush3.msra.mxu0 %v788_v58 }
 0x1e9   : > { %4619 = vmatmul.mubr.msk.f32.vlgmr.msra.gmra.mxu0 %vm955_vm12, %v5319_v49  ;;  %4630 = vmatprep.subr.mxu0 %v950_v61 }
 0x1ea   : > { %4621 = vmatprep.mubr.msk.f32.mxu0 %vm955_vm12, %v5327_v52  ;;  %4631 = vmatpush3.msra.mxu0 %v950_v61 }
 0x1eb   : > { %4632 = vmatprep.subr.mxu0 %v949_v62 }
 0x1ec   : > { %4633 = vmatpush3.msra.mxu0 %v949_v62 }
 0x1ed   : > { %4622 = vmatmul.mubr.msk.f32.gmra.mxu0 %vm955_vm12, %v5325_v51  ;;  %4634 = vmatprep.subr.mxu0 %v948_v63 }
 0x1ee   : > { %4624 = vmatprep.mubr.msk.f32.mxu0 %vm955_vm12, %v5331_v54  ;;  %4635 = vmatpush3.msra.mxu0 %v948_v63 }
 0x1ef   : > { %4636 = vmatprep.subr.mxu0 %v947_v0 }
 0x1f0   : > { %4637 = vmatpush3.msra.mxu0 %v947_v0 }
 0x1f1   : > { %4625 = vmatmul.mubr.msk.f32.gmra.mxu0 %vm955_vm12, %v5329_v53 }
 0x1f2   : > { %4627 = vmatprep.mubr.msk.f32.mxu0 %vm955_vm12, %v5335_v56 }
 0x1f5   : > { %4628 = vmatmul.mubr.msk.f32.gmra.mxu0 %vm955_vm12, %v5333_v55 }
 0x1f6   : > { %4638 = vmatprep.mubr.msk.f32.mxu0 %vm955_vm12, %v5321_v50 }
 0x1f9   : > { %4639 = vmatmul.mubr.msk.f32.vlgmr.msra.gmra.mxu0 %vm955_vm12, %v5319_v49 }
 0x1fa   : > { %4641 = vmatprep.mubr.msk.f32.mxu0 %vm955_vm12, %v5327_v52 }
 0x1fd   : > { %4642 = vmatmul.mubr.msk.f32.gmra.mxu0 %vm955_vm12, %v5325_v51 }
 0x1fe   : > { %4644 = vmatprep.mubr.msk.f32.mxu0 %vm955_vm12, %v5331_v54 }
 0x201   : > { %4645 = vmatmul.mubr.msk.f32.gmra.mxu0 %vm955_vm12, %v5329_v53 }
 0x202   : > { %4647 = vmatprep.mubr.msk.f32.mxu0 %vm955_vm12, %v5335_v56 }
 0x205   : > { %4648 = vmatmul.mubr.msk.f32.gmra.mxu0 %vm955_vm12, %v5333_v55 }
 0x2a9   : > { %v5379_v1 = vpop.f32.mrf.mxu0 }
 0x2aa   : > { %v1193_v41 = vsel %vm345_vm1, %v5379_v1, -inf }
 0x2ab   : > { %v5381_v2 = vpop.f32.mrf.mxu0 }
 0x2ac   : > { %v1190_v45 = vsel %vm345_vm1, %v5381_v2, -inf }
 0x2ad   : > { %v5383_v4 = vpop.f32.mrf.mxu0 }
 0x2ae   : > { %v1199_v33 = vsel %vm345_vm1, %v5383_v4, -inf }
 0x2af   : > { %v5385_v5 = vpop.f32.mrf.mxu0 }
 0x2b0   : > { %v1196_v37 = vsel %vm345_vm1, %v5385_v5, -inf }
 0x2b1   : > { %v5387_v6 = vpop.f32.mrf.mxu0 }
 0x2b2   : > { %v1205_v28 = vsel %vm345_vm1, %v5387_v6, -inf }
 0x2b3   : > { %v5389_v7 = vpop.f32.mrf.mxu0 }
 0x2b4   : > { %v1202_v30 = vsel %vm345_vm1, %v5389_v7, -inf }
 0x2b5   : > { %v5391_v8 = vpop.f32.mrf.mxu0 }
 0x2b6   : > { %v1211_v9 = vsel %vm345_vm1, %v5391_v8, -inf }
 0x2b7   : > { %1212 = vmax.xlane.f32.xlu0 %v1211_v9  ;;  %v5395_v10 = vpop.f32.mrf.mxu0 }
 0x2b8   : > { %v1208_v11 = vsel %vm345_vm1, %v5395_v10, -inf }
 0x2b9   : > { %1209 = vmax.xlane.f32.xlu1 %v1208_v11  ;;  %v5399_v12 = vpop.f32.mrf.mxu0 }
 0x2ba   : > { %v1218_v43 = vsel %vm1214_vm13, %v5399_v12, -inf }
 0x2bb   : > { %v5401_v13 = vpop.f32.mrf.mxu0 }
 0x2bc   : > { %v1215_v47 = vsel %vm1214_vm13, %v5401_v13, -inf }
 0x2bd   : > { %v5403_v14 = vpop.f32.mrf.mxu0 }
 0x2be   : > { %v1224_v35 = vsel %vm1214_vm13, %v5403_v14, -inf }
 0x2bf   : > { %v5405_v15 = vpop.f32.mrf.mxu0 }
 0x2c0   : > { %v1221_v39 = vsel %vm1214_vm13, %v5405_v15, -inf }
 0x2c1   : > { %v5407_v16 = vpop.f32.mrf.mxu0 }
 0x2c2   : > { %v1230_v29 = vsel %vm1214_vm13, %v5407_v16, -inf }
 0x2c3   : > { %v5418_v20 = vpop.f32.mrf.mxu0 }
 0x2c4   : > { %v1227_v31 = vsel %vm1214_vm13, %v5418_v20, -inf }
 0x2c5   : > { %v5422_v21 = vpop.f32.mrf.mxu0 }
 0x2c6   : > { %v1236_v23 = vsel %vm1214_vm13, %v5422_v21, -inf }
 0x2c7   : > { %1237 = vmax.xlane.f32.xlu0 %v1236_v23  ;;  %v5433_v25 = vpop.f32.mrf.mxu0 }
 0x2c8   : > { %v1233_v26 = vsel %vm1214_vm13, %v5433_v25, -inf }
 0x2c9   : > { %1234 = vmax.xlane.f32.xlu1 %v1233_v26 }
 0x2cb   : > { %1206 = vmax.xlane.f32.xlu0 %v1205_v28 }
 0x2cd   : > { %1231 = vmax.xlane.f32.xlu1 %v1230_v29 }
 0x2cf   : > { %1203 = vmax.xlane.f32.xlu0 %v1202_v30 }
 0x2d1   : > { %1228 = vmax.xlane.f32.xlu1 %v1227_v31 }
 0x2d3   : > { %1200 = vmax.xlane.f32.xlu0 %v1199_v33 }
 0x2d5   : > { %1225 = vmax.xlane.f32.xlu1 %v1224_v35 }
 0x2d7   : > { %1197 = vmax.xlane.f32.xlu0 %v1196_v37 }
 0x2d9   : > { %1222 = vmax.xlane.f32.xlu1 %v1221_v39 }
 0x2db   : > { %1194 = vmax.xlane.f32.xlu0 %v1193_v41 }
 0x2dd   : > { %1219 = vmax.xlane.f32.xlu1 %v1218_v43 }
 0x2df   : > { %1191 = vmax.xlane.f32.xlu0 %v1190_v45 }
 0x2e1   : > { %1216 = vmax.xlane.f32.xlu1 %v1215_v47 }
 0x340   : > { %v1213_v58 = vpop.xlane.xlu0 %1212 }
 0x342   : > { %v1210_v59 = vpop.xlane.xlu1 %1209 }
 0x350   : > { %v1238_v60 = vpop.xlane.xlu0 %1237 }
 0x351   : > { %v1246_v61 = vmax.f32 %v1213_v58, %v1238_v60 }
 0x352   : > { %v1235_v62 = vpop.xlane.xlu1 %1234 }
 0x353   : > { %v1254_v63 = vsub.f32 %v5391_v8, %v1246_v61  ;;  %v1278_v0 = vsub.f32 %v5422_v21, %v1246_v61  ;;  %v1245_v9 = vmax.f32 %v1210_v59, %v1235_v62 }
 0x354   : > { %v1207_v11 = vpop.xlane.xlu0 %1206 }
 0x355   : > { %v1269_v17 = vmul.f32 1.442695, %v1254_v63  ;;  %v1293_v18 = vmul.f32 1.442695, %v1278_v0  ;;  %v1253_v19 = vsub.f32 %v5395_v10, %v1245_v9  ;;  %v1277_v22 = vsub.f32 %v5433_v25, %v1245_v9 }
 0x356   : > { %v1232_v23 = vpop.xlane.xlu1 %1231 }
 0x357   : > { %5009 = vpow2.f32 %v1269_v17  ;;  %v1267_v24 = vmul.f32 1.442695, %v1253_v19  ;;  %v1291_v26 = vmul.f32 1.442695, %v1277_v22  ;;  %v1244_v27 = vmax.f32 %v1207_v11, %v1232_v23 }
 0x358   : > { %5011 = vpow2.f32 %v1293_v18  ;;  %v1204_v28 = vpop.xlane.xlu0 %1203 }
 0x359   : > { %5013 = vpow2.f32 %v1267_v24  ;;  %v1252_v8 = vsub.f32 %v5387_v6, %v1244_v27  ;;  %v1276_v21 = vsub.f32 %v5407_v16, %v1244_v27 }
 0x35a   : > { %5015 = vpow2.f32 %v1291_v26  ;;  %v1229_v29 = vpop.xlane.xlu1 %1228 }
 0x35b   : > { %v1265_v30 = vmul.f32 1.442695, %v1252_v8  ;;  %v1289_v31 = vmul.f32 1.442695, %v1276_v21  ;;  %v1243_v32 = vmax.f32 %v1204_v28, %v1229_v29 }
 0x35c   : > { %v1201_v10 = vpop.xlane.xlu0 %1200 }
 0x35d   : > { %5017 = vpow2.f32 %v1265_v30  ;;  %v1251_v25 = vsub.f32 %v5389_v7, %v1243_v32  ;;  %v1275_v33 = vsub.f32 %v5418_v20, %v1243_v32 }
 0x35e   : > { %5019 = vpow2.f32 %v1289_v31  ;;  %v1226_v34 = vpop.xlane.xlu1 %1225 }
 0x35f   : > { %v1263_v35 = vmul.f32 1.442695, %v1251_v25  ;;  %v1287_v36 = vmul.f32 1.442695, %v1275_v33  ;;  %v1242_v37 = vmax.f32 %v1201_v10, %v1226_v34 }
 0x360   : > { %v1198_v38 = vpop.xlane.xlu0 %1197 }
 0x361   : > { %5021 = vpow2.f32 %v1263_v35  ;;  %v1250_v6 = vsub.f32 %v5383_v4, %v1242_v37  ;;  %v1274_v16 = vsub.f32 %v5403_v14, %v1242_v37 }
 0x362   : > { %5023 = vpow2.f32 %v1287_v36  ;;  %v1223_v39 = vpop.xlane.xlu1 %1222 }
 0x363   : > { %v1261_v40 = vmul.f32 1.442695, %v1250_v6  ;;  %v1285_v41 = vmul.f32 1.442695, %v1274_v16  ;;  %v1241_v42 = vmax.f32 %v1198_v38, %v1223_v39  ;;  %v5587_v16 = vpop.f32.mrf.mxu1 }
 0x364   : > { %v5517_v43 = vpop.eup %5009  ;;  %v1195_v7 = vpop.xlane.xlu0 %1194 }
 0x365   : > { %v5519_v20 = vpop.eup %5011  ;;  %5025 = vpow2.f32 %v1261_v40  ;;  %v1249_v44 = vsub.f32 %v5385_v5, %v1241_v42  ;;  %v1273_v45 = vsub.f32 %v5405_v15, %v1241_v42  ;;  %v1316_v4 = vsel %vm345_vm1, %v5517_v43, 0.0  ;;  %v5589_v39 = vpop.f32.mrf.mxu1  ;;  %v330_v40 = vld [vmem:[%s6603_s2 + $0xa0] sm:$0xff] }
 0x366   : > { %v5525_v46 = vpop.eup %5013  ;;  %5027 = vpow2.f32 %v1285_v41  ;;  %1317 = vadd.xlane.f32.xlu0 %v1316_v4  ;;  %v1340_v14 = vsel %vm1214_vm13, %v5519_v20, 0.0  ;;  %v1220_v47 = vpop.xlane.xlu1 %1219  ;;  %4592 = vmatprep.mubr.msk.f32.mxu1 %vm496_vm11, %v330_v40  ;;  %v331_v41 = vld [vmem:[%s6603_s2 + $0xa8] sm:$0xff] }
 0x367   : > { %v5529_v48 = vpop.eup %5015  ;;  %v1259_v57 = vmul.f32 1.442695, %v1249_v44  ;;  %v1283_v58 = vmul.f32 1.442695, %v1273_v45  ;;  %1341 = vadd.xlane.f32.xlu1 %v1340_v14  ;;  %v1240_v59 = vmax.f32 %v1195_v7, %v1220_v47  ;;  %v1313_v60 = vsel %vm345_vm1, %v5525_v46, 0.0  ;;  %v5598_v42 = vpop.f32.mrf.mxu1  ;;  %4593 = vmatmul.mubr.msk.f32.gmra.mxu1 %vm496_vm11, %v331_v41  ;;  %v332_v44 = vld [vmem:[%s6603_s2 + $0xb0] sm:$0xff] }
 0x368   : > { %v1192_v62 = vpop.xlane.xlu0 %1191  ;;  %v1337_v63 = vsel %vm1214_vm13, %v5529_v48, 0.0  ;;  %4595 = vmatprep.mubr.msk.f32.mxu1 %vm496_vm11, %v332_v44  ;;  %v333_v45 = vld [vmem:[%s6603_s2 + $0xb8] sm:$0xff]  ;;  %v334_v14 = vld [vmem:[%s6603_s2 + $0xc0] sm:$0xff]  ;;  %v335_v47 = vld [vmem:[%s6603_s2 + $0xc8] sm:$0xff] }
 0x369   : > { %5029 = vpow2.f32 %v1259_v57  ;;  %v1248_v5 = vsub.f32 %v5379_v1, %v1240_v59  ;;  %v1272_v15 = vsub.f32 %v5399_v12, %v1240_v59  ;;  %v5601_v7 = vpop.f32.mrf.mxu1  ;;  %v336_v59 = vld [vmem:[%s6603_s2 + $0xd0] sm:$0xff] }
 0x36a   : > { %v5535_v61 = vpop.eup %5017  ;;  %5031 = vpow2.f32 %v1283_v58  ;;  %1314 = vadd.xlane.f32.xlu0 %v1313_v60  ;;  %v1217_v0 = vpop.xlane.xlu1 %1216 }
 0x36b   : > { %v5539_v9 = vpop.eup %5019  ;;  %v1257_v11 = vmul.f32 1.442695, %v1248_v5  ;;  %v1281_v17 = vmul.f32 1.442695, %v1272_v15  ;;  %1338 = vadd.xlane.f32.xlu1 %v1337_v63  ;;  %v1239_v1 = vmax.f32 %v1192_v62, %v1217_v0  ;;  %v1310_v19 = vsel %vm345_vm1, %v5535_v61, 0.0  ;;  %v5610_v4 = vpop.f32.mrf.mxu1  ;;  %4596 = vmatmul.mubr.msk.f32.gmra.mxu1 %vm496_vm11, %v333_v45  ;;  %v337_v5 = vld [vmem:[%s6603_s2 + $0xd8] sm:$0xff] }
 0x36c   : > { %v1334_v23 = vsel %vm1214_vm13, %v5539_v9, 0.0  ;;  %4598 = vmatprep.mubr.msk.f32.mxu1 %vm496_vm11, %v334_v14  ;;  %v338_v62 = vld [vmem:[%s6603_s2 + $0xe0] sm:$0xff]  ;;  %v339_v63 = vld [vmem:[%s6603_s2 + $0xe8] sm:$0xff] }
 0x36d   : > { %5033 = vpow2.f32 %v1257_v11  ;;  %v1247_v12 = vsub.f32 %v5381_v2, %v1239_v1  ;;  %v1271_v18 = vsub.f32 %v5401_v13, %v1239_v1  ;;  %v5619_v57 = vpop.f32.mrf.mxu1  ;;  %v341_v1 = vld [vmem:[%s6603_s2 + $0xf8] sm:$0xff] }
 0x36e   : > { %v5545_v22 = vpop.eup %5021  ;;  %5035 = vpow2.f32 %v1281_v17  ;;  %1311 = vadd.xlane.f32.xlu0 %v1310_v19  ;;  %v340_v17 = vld [vmem:[%s6603_s2 + $0xf0] sm:$0xff]  ;;  %v951_v19 = vld [vmem:[%s6605_s4] sm:$0xff] }
 0x36f   : > { %v5549_v24 = vpop.eup %5023  ;;  %v1255_v26 = vmul.f32 1.442695, %v1247_v12  ;;  %v1279_v27 = vmul.f32 1.442695, %v1271_v18  ;;  %1335 = vadd.xlane.f32.xlu1 %v1334_v23  ;;  %v1307_v2 = vsel %vm345_vm1, %v5545_v22, 0.0  ;;  %v5622_v58 = vpop.f32.mrf.mxu1  ;;  %4599 = vmatmul.mubr.msk.f32.gmra.mxu1 %vm496_vm11, %v335_v47 }
 0x370   : > { %v1331_v28 = vsel %vm1214_vm13, %v5549_v24, 0.0  ;;  %4601 = vmatprep.mubr.msk.f32.mxu1 %vm496_vm11, %v336_v59  ;;  %4666 = vmatprep.mubr.msk.f32.mxu0 %vm1214_vm13, %v951_v19 }
 0x371   : > { %5037 = vpow2.f32 %v1255_v26  ;;  %v5632_v15 = vpop.f32.mrf.mxu1 }
 0x372   : > { %v5553_v13 = vpop.eup %5025  ;;  %5039 = vpow2.f32 %v1279_v27  ;;  %1308 = vadd.xlane.f32.xlu0 %v1307_v2 }
 0x373   : > { %v5557_v8 = vpop.eup %5027  ;;  %1332 = vadd.xlane.f32.xlu1 %v1331_v28  ;;  %v1304_v21 = vsel %vm345_vm1, %v5553_v13, 0.0  ;;  %v5635_v60 = vpop.f32.mrf.mxu1  ;;  %4602 = vmatmul.mubr.msk.f32.gmra.mxu1 %vm496_vm11, %v337_v5 }
 0x374   : > { %v1328_v30 = vsel %vm1214_vm13, %v5557_v8, 0.0  ;;  %4604 = vmatprep.mubr.msk.f32.mxu1 %vm496_vm11, %v338_v62 }
 0x375   : > { %v5646_v0 = vpop.f32.mrf.mxu1 }
 0x376   : > { %v5561_v29 = vpop.eup %5029  ;;  %1305 = vadd.xlane.f32.xlu0 %v1304_v21 }
 0x377   : > { %v5565_v31 = vpop.eup %5031  ;;  %1329 = vadd.xlane.f32.xlu1 %v1328_v30  ;;  %v1301_v32 = vsel %vm345_vm1, %v5561_v29, 0.0  ;;  %v5649_v11 = vpop.f32.mrf.mxu1  ;;  %4605 = vmatmul.mubr.msk.f32.gmra.mxu1 %vm496_vm11, %v339_v63 }
 0x378   : > { %v1325_v25 = vsel %vm1214_vm13, %v5565_v31, 0.0  ;;  %4607 = vmatprep.mubr.msk.f32.mxu1 %vm496_vm11, %v340_v17 }
 0x379   : > { %v5660_v12 = vpop.f32.mrf.mxu1 }
 0x37a   : > { %v5569_v10 = vpop.eup %5033  ;;  %1302 = vadd.xlane.f32.xlu0 %v1301_v32 }
 0x37b   : > { %v5573_v33 = vpop.eup %5035  ;;  %1326 = vadd.xlane.f32.xlu1 %v1325_v25  ;;  %v1298_v34 = vsel %vm345_vm1, %v5569_v10, 0.0  ;;  %v5663_v18 = vpop.f32.mrf.mxu1  ;;  %4608 = vmatmul.mubr.msk.f32.gmra.mxu1 %vm496_vm11, %v341_v1 }
 0x37c   : > { %v1322_v36 = vsel %vm1214_vm13, %v5573_v33, 0.0 }
 0x37d   : > { %v868_v23 = vpop.f32.mrf.mxu1 }
 0x37e   : > { %v5577_v35 = vpop.eup %5037  ;;  %1299 = vadd.xlane.f32.xlu0 %v1298_v34  ;;  %4688 = vmatprep.mubr.msk.f32.mxu1 %vm345_vm1, %v868_v23 }
 0x37f   : > { %v5581_v37 = vpop.eup %5039  ;;  %1323 = vadd.xlane.f32.xlu1 %v1322_v36  ;;  %v1295_v38 = vsel %vm345_vm1, %v5577_v35, 0.0 }
 0x380   : > { %v1319_v6 = vsel %vm1214_vm13, %v5581_v37, 0.0 }
 0x382   : > { %1296 = vadd.xlane.f32.xlu0 %v1295_v38 }
 0x383   : > { %1320 = vadd.xlane.f32.xlu1 %v1319_v6 }
 0x394   : > { %1630 = vrot.lane.b32.xlu1 %v5319_v49, %s5210_s9 }
 0x398   : > { %1632 = vrot.lane.b32.xlu1 %v5327_v52, %s5210_s9  ;;  %1628 = vrot.lane.b32.xlu0 %v5321_v50, %s5210_s9 }
 0x39c   : > { %1634 = vrot.lane.b32.xlu1 %v5325_v51, %s5210_s9  ;;  %1636 = vrot.lane.b32.xlu0 %v5331_v54, %s5210_s9 }
 0x3a0   : > { %1638 = vrot.lane.b32.xlu1 %v5329_v53, %s5210_s9  ;;  %1640 = vrot.lane.b32.xlu0 %v5335_v56, %s5210_s9 }
 0x3a4   : > { %1642 = vrot.lane.b32.xlu1 %v5333_v55, %s5210_s9 }
 0x3ef   : > { %v1318_v26 = vpop.xlane.xlu0 %1317 }
 0x3f0   : > { %v1342_v27 = vpop.xlane.xlu1 %1341 }
 0x3f1   : > { %v1350_v2 = vadd.f32 %v1342_v27, %v1318_v26 }
 0x3f3   : > { %5041 = vrcp.f32 %v1350_v2  ;;  %v1315_v28 = vpop.xlane.xlu0 %1314 }
 0x3f4   : > { %v1339_v21 = vpop.xlane.xlu1 %1338 }
 0x3f5   : > { %v1349_v30 = vadd.f32 %v1339_v21, %v1315_v28 }
 0x3f7   : > { %5043 = vrcp.f32 %v1349_v30  ;;  %v1312_v32 = vpop.xlane.xlu0 %1311 }
 0x3f8   : > { %v1336_v25 = vpop.xlane.xlu1 %1335 }
 0x3f9   : > { %v1348_v34 = vadd.f32 %v1336_v25, %v1312_v32 }
 0x3fb   : > { %5045 = vrcp.f32 %v1348_v34  ;;  %v1309_v36 = vpop.xlane.xlu0 %1308 }
 0x3fc   : > { %v1333_v38 = vpop.xlane.xlu1 %1332 }
 0x3fd   : > { %v1347_v6 = vadd.f32 %v1333_v38, %v1309_v36  ;;  %v4119_v38 = vld [vmem:[%s6604_s3 + $0x38] sm:$0xff] }
 0x3ff   : > { %5047 = vrcp.f32 %v1347_v6  ;;  %v1306_v40 = vpop.xlane.xlu0 %1305 }
 0x400   : > { %v5042_v41 = vpop.eup %5041  ;;  %v1330_v44 = vpop.xlane.xlu1 %1329 }
 0x401   : > { %v1346_v45 = vadd.f32 %v1330_v44, %v1306_v40  ;;  %v1374_v14 = vmul.f32 %v5042_v41, %v5519_v20  ;;  %v1366_v47 = vmul.f32 %v5042_v41, %v5517_v43  ;;  %v953_v40 = vld [vmem:[%s6605_s4 + $0x10] sm:$0xff]  ;;  %v954_v41 = vld [vmem:[%s6605_s4 + $0x18] sm:$0xff] }
 0x403   : > { %5049 = vrcp.f32 %v1346_v45  ;;  %4650 = vmatprep.subr.msk.mxu0 %vm1214_vm13, %v1374_v14  ;;  %4672 = vmatprep.subr.msk.mxu1 %vm345_vm1, %v1366_v47  ;;  %v1303_v59 = vpop.xlane.xlu0 %1302  ;;  %v4116_v45 = vld [vmem:[%s6604_s3 + $0x20] sm:$0xff] }
 0x404   : > { %v5044_v5 = vpop.eup %5043  ;;  %4651 = vmatpush3.xpose.msk.msra.mxu0 %vm1214_vm13, %v1374_v14  ;;  %4673 = vmatpush3.xpose.msk.msra.mxu1 %vm345_vm1, %v1366_v47  ;;  %v1327_v62 = vpop.xlane.xlu1 %1326 }
 0x405   : > { %v1345_v63 = vadd.f32 %v1327_v62, %v1303_v59  ;;  %v1373_v17 = vmul.f32 %v5044_v5, %v5529_v48  ;;  %v1365_v1 = vmul.f32 %v5044_v5, %v5525_v46 }
 0x407   : > { %5051 = vrcp.f32 %v1345_v63  ;;  %4652 = vmatprep.subr.msk.mxu0 %vm1214_vm13, %v1373_v17  ;;  %4674 = vmatprep.subr.msk.mxu1 %vm345_vm1, %v1365_v1  ;;  %v1300_v43 = vpop.xlane.xlu0 %1299 }
 0x408   : > { %v5046_v20 = vpop.eup %5045  ;;  %4653 = vmatpush3.xpose.msk.msra.mxu0 %vm1214_vm13, %v1373_v17  ;;  %4675 = vmatpush3.xpose.msk.msra.mxu1 %vm345_vm1, %v1365_v1  ;;  %v1324_v19 = vpop.xlane.xlu1 %1323 }
 0x409   : > { %v1344_v23 = vadd.f32 %v1324_v19, %v1300_v43  ;;  %v1372_v26 = vmul.f32 %v5046_v20, %v5539_v9  ;;  %v1364_v27 = vmul.f32 %v5046_v20, %v5535_v61 }
 0x40b   : > { %5053 = vrcp.f32 %v1344_v23  ;;  %4654 = vmatprep.subr.msk.mxu0 %vm1214_vm13, %v1372_v26  ;;  %4676 = vmatprep.subr.msk.mxu1 %vm345_vm1, %v1364_v27  ;;  %v1297_v46 = vpop.xlane.xlu0 %1296 }
 0x40c   : > { %v5048_v48 = vpop.eup %5047  ;;  %4655 = vmatpush3.xpose.msk.msra.mxu0 %vm1214_vm13, %v1372_v26  ;;  %4677 = vmatpush3.xpose.msk.msra.mxu1 %vm345_vm1, %v1364_v27  ;;  %v1321_v2 = vpop.xlane.xlu1 %1320 }
 0x40d   : > { %v1343_v28 = vadd.f32 %v1321_v2, %v1297_v46  ;;  %v1371_v21 = vmul.f32 %v5048_v48, %v5549_v24  ;;  %v1363_v30 = vmul.f32 %v5048_v48, %v5545_v22 }
 0x40f   : > { %5055 = vrcp.f32 %v1343_v28  ;;  %4656 = vmatprep.subr.msk.mxu0 %vm1214_vm13, %v1371_v21  ;;  %4678 = vmatprep.subr.msk.mxu1 %vm345_vm1, %v1363_v30 }
 0x410   : > { %v5050_v61 = vpop.eup %5049  ;;  %4657 = vmatpush3.xpose.msk.msra.mxu0 %vm1214_vm13, %v1371_v21  ;;  %4679 = vmatpush3.xpose.msk.msra.mxu1 %vm345_vm1, %v1363_v30 }
 0x411   : > { %v1370_v9 = vmul.f32 %v5050_v61, %v5557_v8  ;;  %v1362_v32 = vmul.f32 %v5050_v61, %v5553_v13 }
 0x413   : > { %4658 = vmatprep.subr.msk.mxu0 %vm1214_vm13, %v1370_v9  ;;  %4680 = vmatprep.subr.msk.mxu1 %vm345_vm1, %v1362_v32 }
 0x414   : > { %v5052_v24 = vpop.eup %5051  ;;  %4659 = vmatpush3.xpose.msk.msra.mxu0 %vm1214_vm13, %v1370_v9  ;;  %4681 = vmatpush3.xpose.msk.msra.mxu1 %vm345_vm1, %v1362_v32 }
 0x415   : > { %v1369_v22 = vmul.f32 %v5052_v24, %v5565_v31  ;;  %v1361_v25 = vmul.f32 %v5052_v24, %v5561_v29 }
 0x417   : > { %4660 = vmatprep.subr.msk.mxu0 %vm1214_vm13, %v1369_v22  ;;  %4682 = vmatprep.subr.msk.mxu1 %vm345_vm1, %v1361_v25 }
 0x418   : > { %v5054_v8 = vpop.eup %5053  ;;  %4661 = vmatpush3.xpose.msk.msra.mxu0 %vm1214_vm13, %v1369_v22  ;;  %4683 = vmatpush3.xpose.msk.msra.mxu1 %vm345_vm1, %v1361_v25 }
 0x419   : > { %v1368_v13 = vmul.f32 %v5054_v8, %v5573_v33  ;;  %v1360_v34 = vmul.f32 %v5054_v8, %v5569_v10  ;;  %v4591_v10 = vpop.f32.mrf.mxu1  ;;  %v952_v33 = vld [vmem:[%s6605_s4 + $0x8] sm:$0xff] }
 0x41b   : > { %4662 = vmatprep.subr.msk.mxu0 %vm1214_vm13, %v1368_v13  ;;  %4684 = vmatprep.subr.msk.mxu1 %vm345_vm1, %v1360_v34  ;;  %v878_v6 = vpop.f32.mrf.mxu1 }
 0x41c   : > { %v5056_v31 = vpop.eup %5055  ;;  %4663 = vmatpush3.xpose.msk.msra.mxu0 %vm1214_vm13, %v1368_v13  ;;  %4685 = vmatpush3.xpose.msk.msra.mxu1 %vm345_vm1, %v1360_v34 }
 0x41d   : > { %v1367_v29 = vmul.f32 %v5056_v31, %v5581_v37  ;;  %v1359_v36 = vmul.f32 %v5056_v31, %v5577_v35  ;;  %v1631_v37 = vpop.permute.xlu1 %1630  ;;  %v4118_v35 = vld [vmem:[%s6604_s3 + $0x30] sm:$0xff] }
 0x41f   : > { %4664 = vmatprep.subr.msk.mxu0 %vm1214_vm13, %v1367_v29  ;;  %4686 = vmatprep.subr.msk.mxu1 %vm345_vm1, %v1359_v36 }
 0x420   : > { %4665 = vmatpush3.xpose.msk.msra.mxu0 %vm1214_vm13, %v1367_v29  ;;  %4687 = vmatpush3.xpose.msk.msra.mxu1 %vm345_vm1, %v1359_v36 }
 0x421   : > { %4694 = vmatprep.subr.mxu0 %v5598_v42  ;;  %4714 = vmatprep.subr.mxu1 %v4119_v38  ;;  %v1633_v44 = vpop.permute.xlu1 %1632 }
 0x423   : > { %4667 = vmatmul.mubr.msk.f32.vlgmr.msra.gmra.mxu0 %vm1214_vm13, %v952_v33  ;;  %4689 = vmatmul.mubr.msk.f32.vlgmr.msra.gmra.mxu1 %vm345_vm1, %v5663_v18  ;;  %v4117_v18 = vld [vmem:[%s6604_s3 + $0x28] sm:$0xff] }
 0x424   : > { %4695 = vmatpush3.msra.mxu0 %v5598_v42  ;;  %4715 = vmatpush3.msra.mxu1 %v4119_v38  ;;  %v1629_v42 = vpop.permute.xlu0 %1628 }
 0x425   : > { %4696 = vmatprep.subr.mxu0 %v5601_v7  ;;  %4716 = vmatprep.subr.mxu1 %v4118_v35 }
 0x426   : > { %4669 = vmatprep.mubr.msk.f32.mxu0 %vm1214_vm13, %v953_v40  ;;  %4691 = vmatprep.mubr.msk.f32.mxu1 %vm345_vm1, %v878_v6 }
 0x427   : > { %4697 = vmatpush3.msra.mxu0 %v5601_v7  ;;  %4717 = vmatpush3.msra.mxu1 %v4118_v35  ;;  %v1635_v7 = vpop.permute.xlu1 %1634  ;;  %v5774_v59 = vpop.f32.mrf.mxu1 }
 0x428   : > { %4670 = vmatmul.mubr.msk.f32.gmra.mxu0 %vm1214_vm13, %v954_v41  ;;  %4692 = vmatmul.mubr.msk.f32.gmra.mxu1 %vm345_vm1, %v4591_v10 }
 0x429   : > { %4698 = vmatprep.subr.mxu0 %v5587_v16  ;;  %4718 = vmatprep.subr.mxu1 %v4117_v18  ;;  %v888_v5 = vpop.f32.mrf.mxu1 }
 0x42a   : > { %4699 = vmatpush3.msra.mxu0 %v5587_v16  ;;  %4702 = vmatprep.mubr.msk.f32.mxu0 %vm955_vm12, %v1629_v42  ;;  %v1637_v16 = vpop.permute.xlu0 %1636 }
 0x42b   : > { %4719 = vmatpush3.msra.mxu1 %v4117_v18  ;;  %4722 = vmatprep.mubr.msk.f32.mxu1 %vm955_vm12, %v1629_v42  ;;  %v1639_v14 = vpop.permute.xlu1 %1638  ;;  %v5777_v62 = vpop.f32.mrf.mxu1 }
 0x42c   : > { %4700 = vmatprep.subr.mxu0 %v5589_v39  ;;  %4720 = vmatprep.subr.mxu1 %v4116_v45 }
 0x42d   : > { %4701 = vmatpush3.msra.mxu0 %v5589_v39  ;;  %4721 = vmatpush3.msra.mxu1 %v4116_v45  ;;  %v5779_v63 = vpop.f32.mrf.mxu1 }
 0x42e   : > { %4703 = vmatmul.mubr.msk.f32.vlgmr.msra.gmra.mxu0 %vm955_vm12, %v1631_v37  ;;  %4723 = vmatmul.mubr.msk.f32.vlgmr.msra.gmra.mxu1 %vm955_vm12, %v1631_v37  ;;  %v1641_v39 = vpop.permute.xlu0 %1640 }
 0x42f   : > { %4705 = vmatprep.mubr.msk.f32.mxu0 %vm955_vm12, %v1633_v44  ;;  %4725 = vmatprep.mubr.msk.f32.mxu1 %vm955_vm12, %v1633_v44  ;;  %v1643_v47 = vpop.permute.xlu1 %1642  ;;  %v5781_v17 = vpop.f32.mrf.mxu1 }
 0x431   : > { %v5783_v1 = vpop.f32.mrf.mxu1 }
 0x432   : > { %4706 = vmatmul.mubr.msk.f32.gmra.mxu0 %vm955_vm12, %v1635_v7  ;;  %4726 = vmatmul.mubr.msk.f32.gmra.mxu1 %vm955_vm12, %v1635_v7 }
 0x433   : > { %4708 = vmatprep.mubr.msk.f32.mxu0 %vm955_vm12, %v1637_v16  ;;  %4728 = vmatprep.mubr.msk.f32.mxu1 %vm955_vm12, %v1637_v16  ;;  %v5785_v43 = vpop.f32.mrf.mxu1 }
 0x435   : > { %v5787_v20 = vpop.f32.mrf.mxu1 }
 0x436   : > { %4709 = vmatmul.mubr.msk.f32.gmra.mxu0 %vm955_vm12, %v1639_v14  ;;  %4729 = vmatmul.mubr.msk.f32.gmra.mxu1 %vm955_vm12, %v1639_v14 }
 0x437   : > { %4711 = vmatprep.mubr.msk.f32.mxu0 %vm955_vm12, %v1641_v39  ;;  %4731 = vmatprep.mubr.msk.f32.mxu1 %vm955_vm12, %v1641_v39  ;;  %v5789_v19 = vpop.f32.mrf.mxu1 }
 0x439   : > { %v5791_v23 = vpop.f32.mrf.mxu1 }
 0x43a   : > { %4712 = vmatmul.mubr.msk.f32.gmra.mxu0 %vm955_vm12, %v1643_v47  ;;  %4732 = vmatmul.mubr.msk.f32.gmra.mxu1 %vm955_vm12, %v1643_v47 }
 0x43b   : > { %4772 = vmatprep.mubr.msk.f32.mxu1 %vm345_vm1, %v888_v5  ;;  %v5793_v26 = vpop.f32.mrf.mxu1 }
 0x43c   : > { %6611 = vst [vmem:[#allocation2_spill] sm:$0xff] %v5793_v26 }
 0x43d   : > { %v5795_v27 = vpop.f32.mrf.mxu1 }
 0x43e   : > { %6612 = vst [vmem:[#allocation3_spill] sm:$0xff] %v5795_v27 }
 0x4e3   : > { %v4668_v46 = vpop.f32.mrf.mxu0  ;;  %v4690_v48 = vpop.f32.mrf.mxu1 }
 0x4e4   : > { %v5797_v2 = vadd.f32 %v4690_v48, %v4668_v46 }
 0x4e5   : > { %v1477_v28 = vpop.f32.mrf.mxu0  ;;  %v1598_v21 = vpop.f32.mrf.mxu1 }
 0x4e6   : > { %v5799_v30 = vadd.f32 %v1598_v21, %v1477_v28 }
 0x4e8   : > { %v4671_v61 = vpop.f32.mrf.mxu0  ;;  %v4693_v9 = vpop.f32.mrf.mxu1 }
 0x4e9   : > { %v5801_v32 = vadd.f32 %v4693_v9, %v4671_v61 }
 0x4ea   : > { %v1487_v24 = vpop.f32.mrf.mxu0  ;;  %v1608_v22 = vpop.f32.mrf.mxu1 }
 0x4eb   : > { %v5803_v25 = vadd.f32 %v1608_v22, %v1487_v24 }
 0x4ee   : > { %v5805_v8 = vpop.f32.mrf.mxu0  ;;  %v5807_v13 = vpop.f32.mrf.mxu1 }
 0x4ef   : > { %v1897_v28 = vsel %vm1214_vm13, %v5807_v13, -inf  ;;  %v1873_v24 = vsel %vm345_vm1, %v5805_v8, -inf }
 0x4f0   : > { %v5809_v34 = vpop.f32.mrf.mxu0  ;;  %v5811_v31 = vpop.f32.mrf.mxu1 }
 0x4f1   : > { %v1894_v61 = vsel %vm1214_vm13, %v5811_v31, -inf  ;;  %v1870_v22 = vsel %vm345_vm1, %v5809_v34, -inf }
 0x4f2   : > { %v5813_v29 = vpop.f32.mrf.mxu0  ;;  %v5815_v36 = vpop.f32.mrf.mxu1 }
 0x4f3   : > { %v1903_v47 = vsel %vm1214_vm13, %v5815_v36, -inf  ;;  %v1879_v21 = vsel %vm345_vm1, %v5813_v29, -inf }
 0x4f4   : > { %v5817_v38 = vpop.f32.mrf.mxu0  ;;  %v5819_v10 = vpop.f32.mrf.mxu1 }
 0x4f5   : > { %v1900_v46 = vsel %vm1214_vm13, %v5819_v10, -inf  ;;  %v1876_v9 = vsel %vm345_vm1, %v5817_v38, -inf }
 0x4f6   : > { %v5821_v33 = vpop.f32.mrf.mxu0  ;;  %v5823_v37 = vpop.f32.mrf.mxu1 }
 0x4f7   : > { %v1909_v7 = vsel %vm1214_vm13, %v5823_v37, -inf  ;;  %v1885_v5 = vsel %vm345_vm1, %v5821_v33, -inf }
 0x4f8   : > { %v5825_v35 = vpop.f32.mrf.mxu0  ;;  %v5827_v6 = vpop.f32.mrf.mxu1 }
 0x4f9   : > { %v1906_v14 = vsel %vm1214_vm13, %v5827_v6, -inf  ;;  %v1882_v48 = vsel %vm345_vm1, %v5825_v35, -inf }
 0x4fa   : > { %v4713_v40 = vpop.f32.mrf.mxu0  ;;  %v4733_v41 = vpop.f32.mrf.mxu1 }
 0x4fb   : > { %v1891_v18 = vsel %vm345_vm1, %v4713_v40, -inf  ;;  %v1915_v44 = vsel %vm1214_vm13, %v4733_v41, -inf }
 0x4fc   : > { %1892 = vmax.xlane.f32.xlu0 %v1891_v18  ;;  %v1756_v42 = vpop.f32.mrf.mxu0  ;;  %1916 = vmax.xlane.f32.xlu1 %v1915_v44  ;;  %v1861_v16 = vpop.f32.mrf.mxu1 }
 0x4fd   : > { %v1888_v45 = vsel %vm345_vm1, %v1756_v42, -inf  ;;  %v1912_v39 = vsel %vm1214_vm13, %v1861_v16, -inf }
 0x500   : > { %1889 = vmax.xlane.f32.xlu0 %v1888_v45  ;;  %1910 = vmax.xlane.f32.xlu1 %v1909_v7 }
 0x504   : > { %1907 = vmax.xlane.f32.xlu1 %v1906_v14  ;;  %1913 = vmax.xlane.f32.xlu0 %v1912_v39 }
 0x508   : > { %1904 = vmax.xlane.f32.xlu1 %v1903_v47  ;;  %1886 = vmax.xlane.f32.xlu0 %v1885_v5 }
 0x50c   : > { %1901 = vmax.xlane.f32.xlu1 %v1900_v46  ;;  %1883 = vmax.xlane.f32.xlu0 %v1882_v48 }
 0x510   : > { %1898 = vmax.xlane.f32.xlu1 %v1897_v28  ;;  %1880 = vmax.xlane.f32.xlu0 %v1879_v21 }
 0x514   : > { %1895 = vmax.xlane.f32.xlu1 %v1894_v61  ;;  %1877 = vmax.xlane.f32.xlu0 %v1876_v9 }
 0x518   : > { %1874 = vmax.xlane.f32.xlu0 %v1873_v24 }
 0x51c   : > { %1871 = vmax.xlane.f32.xlu0 %v1870_v22 }
 0x585   : > { %v1893_v18 = vpop.xlane.xlu0 %1892  ;;  %v1917_v44 = vpop.xlane.xlu1 %1916 }
 0x586   : > { %v1925_v45 = vmax.f32 %v1893_v18, %v1917_v44 }
 0x588   : > { %v1933_v7 = vsub.f32 %v4713_v40, %v1925_v45  ;;  %v1957_v14 = vsub.f32 %v4733_v41, %v1925_v45 }
 0x589   : > { %v1890_v39 = vpop.xlane.xlu0 %1889  ;;  %v1911_v47 = vpop.xlane.xlu1 %1910 }
 0x58a   : > { %v1948_v5 = vmul.f32 1.442695, %v1933_v7  ;;  %v1972_v46 = vmul.f32 1.442695, %v1957_v14 }
 0x58c   : > { %5057 = vpow2.f32 %v1948_v5 }
 0x58d   : > { %5059 = vpow2.f32 %v1972_v46  ;;  %v1908_v48 = vpop.xlane.xlu1 %1907  ;;  %v1914_v28 = vpop.xlane.xlu0 %1913 }
 0x58e   : > { %v1924_v21 = vmax.f32 %v1890_v39, %v1914_v28 }
 0x590   : > { %v1932_v61 = vsub.f32 %v1756_v42, %v1924_v21  ;;  %v1956_v9 = vsub.f32 %v1861_v16, %v1924_v21 }
 0x591   : > { %v1887_v24 = vpop.xlane.xlu0 %1886  ;;  %v1905_v27 = vpop.xlane.xlu1 %1904 }
 0x592   : > { %v1946_v3 = vmul.f32 1.442695, %v1932_v61  ;;  %v1970_v26 = vmul.f32 1.442695, %v1956_v9  ;;  %v1923_v22 = vmax.f32 %v1887_v24, %v1911_v47 }
 0x594   : > { %5061 = vpow2.f32 %v1946_v3  ;;  %v1931_v40 = vsub.f32 %v5821_v33, %v1923_v22  ;;  %v1955_v41 = vsub.f32 %v5823_v37, %v1923_v22 }
 0x595   : > { %5063 = vpow2.f32 %v1970_v26  ;;  %v1884_v18 = vpop.xlane.xlu0 %1883  ;;  %v1902_v39 = vpop.xlane.xlu1 %1901 }
 0x596   : > { %v1944_v44 = vmul.f32 1.442695, %v1931_v40  ;;  %v1968_v45 = vmul.f32 1.442695, %v1955_v41  ;;  %v1922_v7 = vmax.f32 %v1884_v18, %v1908_v48 }
 0x598   : > { %5065 = vpow2.f32 %v1944_v44  ;;  %v1930_v14 = vsub.f32 %v5825_v35, %v1922_v7  ;;  %v1954_v42 = vsub.f32 %v5827_v6, %v1922_v7 }
 0x599   : > { %v5861_v16 = vpop.eup %5057  ;;  %5067 = vpow2.f32 %v1968_v45  ;;  %v1881_v47 = vpop.xlane.xlu0 %1880 }
 0x59a   : > { %v5863_v3 = vpop.eup %5059  ;;  %v1942_v33 = vmul.f32 1.442695, %v1930_v14  ;;  %v1966_v5 = vmul.f32 1.442695, %v1954_v42  ;;  %v1921_v37 = vmax.f32 %v1881_v47, %v1905_v27  ;;  %v1995_v26 = vsel %vm345_vm1, %v5861_v16, 0.0  ;;  %v1899_v9 = vpop.xlane.xlu1 %1898 }
 0x59b   : > { %v2019_v46 = vsel %vm1214_vm13, %v5863_v3, 0.0  ;;  %1996 = vadd.xlane.f32.xlu0 %v1995_v26 }
 0x59c   : > { %5069 = vpow2.f32 %v1942_v33  ;;  %v1929_v35 = vsub.f32 %v5813_v29, %v1921_v37  ;;  %v1953_v6 = vsub.f32 %v5815_v36, %v1921_v37  ;;  %2020 = vadd.xlane.f32.xlu1 %v2019_v46 }
 0x59d   : > { %5071 = vpow2.f32 %v1966_v5  ;;  %v1878_v48 = vpop.xlane.xlu0 %1877 }
 0x59e   : > { %v1940_v28 = vmul.f32 1.442695, %v1929_v35  ;;  %v1964_v21 = vmul.f32 1.442695, %v1953_v6  ;;  %v1920_v61 = vmax.f32 %v1878_v48, %v1902_v39  ;;  %v1896_v14 = vpop.xlane.xlu1 %1895 }
 0x5a0   : > { %5073 = vpow2.f32 %v1940_v28  ;;  %v1928_v27 = vsub.f32 %v5817_v38, %v1920_v61  ;;  %v1952_v24 = vsub.f32 %v5819_v10, %v1920_v61 }
 0x5a1   : > { %v5873_v22 = vpop.eup %5061  ;;  %5075 = vpow2.f32 %v1964_v21  ;;  %v1875_v40 = vpop.xlane.xlu0 %1874 }
 0x5a2   : > { %v5875_v41 = vpop.eup %5063  ;;  %v1938_v29 = vmul.f32 1.442695, %v1928_v27  ;;  %v1962_v36 = vmul.f32 1.442695, %v1952_v24  ;;  %v1919_v18 = vmax.f32 %v1875_v40, %v1899_v9  ;;  %v1992_v44 = vsel %vm345_vm1, %v5873_v22, 0.0 }
 0x5a3   : > { %v2016_v45 = vsel %vm1214_vm13, %v5875_v41, 0.0  ;;  %1993 = vadd.xlane.f32.xlu0 %v1992_v44 }
 0x5a4   : > { %5077 = vpow2.f32 %v1938_v29  ;;  %v1927_v38 = vsub.f32 %v5805_v8, %v1919_v18  ;;  %v1951_v10 = vsub.f32 %v5807_v13, %v1919_v18  ;;  %2017 = vadd.xlane.f32.xlu1 %v2016_v45 }
 0x5a5   : > { %v5883_v7 = vpop.eup %5065  ;;  %5079 = vpow2.f32 %v1962_v36  ;;  %v1872_v42 = vpop.xlane.xlu0 %1871 }
 0x5a6   : > { %v5885_v39 = vpop.eup %5067  ;;  %v1936_v47 = vmul.f32 1.442695, %v1927_v38  ;;  %v1960_v33 = vmul.f32 1.442695, %v1951_v10  ;;  %v1918_v5 = vmax.f32 %v1872_v42, %v1896_v14  ;;  %v1989_v37 = vsel %vm345_vm1, %v5883_v7, 0.0 }
 0x5a7   : > { %v2013_v26 = vsel %vm1214_vm13, %v5885_v39, 0.0  ;;  %1990 = vadd.xlane.f32.xlu0 %v1989_v37 }
 0x5a8   : > { %5081 = vpow2.f32 %v1936_v47  ;;  %v1926_v8 = vsub.f32 %v5809_v34, %v1918_v5  ;;  %v1950_v13 = vsub.f32 %v5811_v31, %v1918_v5  ;;  %2014 = vadd.xlane.f32.xlu1 %v2013_v26  ;;  %v4120_v47 = vld [vmem:[%s6605_s4 + $0x20] sm:$0xff] }
 0x5a9   : > { %v5893_v46 = vpop.eup %5069  ;;  %5083 = vpow2.f32 %v1960_v33  ;;  %4750 = vmatprep.mubr.msk.f32.mxu0 %vm1214_vm13, %v4120_v47 }
 0x5aa   : > { %v5895_v35 = vpop.eup %5071  ;;  %v1934_v6 = vmul.f32 1.442695, %v1926_v8  ;;  %v1958_v48 = vmul.f32 1.442695, %v1950_v13  ;;  %v1986_v28 = vsel %vm345_vm1, %v5893_v46, 0.0 }
 0x5ab   : > { %v2010_v21 = vsel %vm1214_vm13, %v5895_v35, 0.0  ;;  %1987 = vadd.xlane.f32.xlu0 %v1986_v28 }
 0x5ac   : > { %5085 = vpow2.f32 %v1934_v6  ;;  %2011 = vadd.xlane.f32.xlu1 %v2010_v21 }
 0x5ad   : > { %v5901_v34 = vpop.eup %5073  ;;  %5087 = vpow2.f32 %v1958_v48 }
 0x5ae   : > { %v5903_v31 = vpop.eup %5075  ;;  %v1983_v61 = vsel %vm345_vm1, %v5901_v34, 0.0 }
 0x5af   : > { %v2007_v9 = vsel %vm1214_vm13, %v5903_v31, 0.0  ;;  %1984 = vadd.xlane.f32.xlu0 %v1983_v61 }
 0x5b0   : > { %2008 = vadd.xlane.f32.xlu1 %v2007_v9 }
 0x5b1   : > { %v5909_v27 = vpop.eup %5077 }
 0x5b2   : > { %v5911_v24 = vpop.eup %5079  ;;  %v1980_v40 = vsel %vm345_vm1, %v5909_v27, 0.0 }
 0x5b3   : > { %v2004_v29 = vsel %vm1214_vm13, %v5911_v24, 0.0  ;;  %1981 = vadd.xlane.f32.xlu0 %v1980_v40 }
 0x5b4   : > { %2005 = vadd.xlane.f32.xlu1 %v2004_v29 }
 0x5b5   : > { %v5917_v36 = vpop.eup %5081 }
 0x5b6   : > { %v5919_v18 = vpop.eup %5083  ;;  %v1977_v44 = vsel %vm345_vm1, %v5917_v36, 0.0 }
 0x5b7   : > { %v2001_v45 = vsel %vm1214_vm13, %v5919_v18, 0.0  ;;  %1978 = vadd.xlane.f32.xlu0 %v1977_v44 }
 0x5b8   : > { %2002 = vadd.xlane.f32.xlu1 %v2001_v45 }
 0x5b9   : > { %v5925_v38 = vpop.eup %5085 }
 0x5ba   : > { %v5927_v10 = vpop.eup %5087  ;;  %v1974_v14 = vsel %vm345_vm1, %v5925_v38, 0.0 }
 0x5bb   : > { %v1998_v42 = vsel %vm1214_vm13, %v5927_v10, 0.0  ;;  %1975 = vadd.xlane.f32.xlu0 %v1974_v14 }
 0x5bc   : > { %1999 = vadd.xlane.f32.xlu1 %v1998_v42 }
 0x5cd   : > { %2456 = vrot.lane.b32.xlu1 %v5319_v49, %s5211_s18 }
 0x5d1   : > { %2458 = vrot.lane.b32.xlu1 %v5327_v52, %s5211_s18  ;;  %2454 = vrot.lane.b32.xlu0 %v5321_v50, %s5211_s18 }
 0x5d5   : > { %2460 = vrot.lane.b32.xlu1 %v5325_v51, %s5211_s18  ;;  %2462 = vrot.lane.b32.xlu0 %v5331_v54, %s5211_s18 }
 0x5d9   : > { %2464 = vrot.lane.b32.xlu1 %v5329_v53, %s5211_s18  ;;  %2466 = vrot.lane.b32.xlu0 %v5335_v56, %s5211_s18 }
 0x5dd   : > { %2468 = vrot.lane.b32.xlu1 %v5333_v55, %s5211_s18 }
 0x624   : > { %v1997_v33 = vpop.xlane.xlu0 %1996 }
 0x625   : > { %v2021_v5 = vpop.xlane.xlu1 %2020 }
 0x626   : > { %v2029_v37 = vadd.f32 %v2021_v5, %v1997_v33 }
 0x628   : > { %5089 = vrcp.f32 %v2029_v37 }
 0x62c   : > { %v1994_v26 = vpop.xlane.xlu0 %1993 }
 0x62d   : > { %v2018_v8 = vpop.xlane.xlu1 %2017 }
 0x62e   : > { %v2028_v13 = vadd.f32 %v2018_v8, %v1994_v26 }
 0x630   : > { %5091 = vrcp.f32 %v2028_v13  ;;  %v1991_v6 = vpop.xlane.xlu0 %1990 }
 0x631   : > { %v2015_v48 = vpop.xlane.xlu1 %2014 }
 0x632   : > { %v2027_v28 = vadd.f32 %v2015_v48, %v1991_v6 }
 0x634   : > { %5093 = vrcp.f32 %v2027_v28  ;;  %v1988_v21 = vpop.xlane.xlu0 %1987 }
 0x635   : > { %v5090_v61 = vpop.eup %5089  ;;  %v2012_v9 = vpop.xlane.xlu1 %2011 }
 0x636   : > { %v2026_v40 = vadd.f32 %v2012_v9, %v1988_v21  ;;  %v2053_v29 = vmul.f32 %v5090_v61, %v5863_v3  ;;  %v2045_v44 = vmul.f32 %v5090_v61, %v5861_v16 }
 0x638   : > { %5095 = vrcp.f32 %v2026_v40  ;;  %4734 = vmatprep.subr.msk.mxu0 %vm1214_vm13, %v2053_v29  ;;  %4756 = vmatprep.subr.msk.mxu1 %vm345_vm1, %v2045_v44  ;;  %v1985_v45 = vpop.xlane.xlu0 %1984 }
 0x639   : > { %v2009_v14 = vpop.xlane.xlu1 %2008  ;;  %4735 = vmatpush3.xpose.msk.msra.mxu0 %vm1214_vm13, %v2053_v29  ;;  %4757 = vmatpush3.xpose.msk.msra.mxu1 %vm345_vm1, %v2045_v44 }
 0x63a   : > { %v2025_v42 = vadd.f32 %v2009_v14, %v1985_v45 }
 0x63c   : > { %5097 = vrcp.f32 %v2025_v42  ;;  %v1982_v47 = vpop.xlane.xlu0 %1981 }
 0x63d   : > { %v5092_v33 = vpop.eup %5091  ;;  %v2006_v5 = vpop.xlane.xlu1 %2005 }
 0x63e   : > { %v2024_v37 = vadd.f32 %v2006_v5, %v1982_v47  ;;  %v2052_v3 = vmul.f32 %v5092_v33, %v5875_v41  ;;  %v2044_v16 = vmul.f32 %v5092_v33, %v5873_v22 }
 0x640   : > { %5099 = vrcp.f32 %v2024_v37  ;;  %4736 = vmatprep.subr.msk.mxu0 %vm1214_vm13, %v2052_v3  ;;  %4758 = vmatprep.subr.msk.mxu1 %vm345_vm1, %v2044_v16  ;;  %v1979_v26 = vpop.xlane.xlu0 %1978 }
 0x641   : > { %v5094_v8 = vpop.eup %5093  ;;  %v2003_v13 = vpop.xlane.xlu1 %2002  ;;  %4737 = vmatpush3.xpose.msk.msra.mxu0 %vm1214_vm13, %v2052_v3  ;;  %4759 = vmatpush3.xpose.msk.msra.mxu1 %vm345_vm1, %v2044_v16 }
 0x642   : > { %v2023_v6 = vadd.f32 %v2003_v13, %v1979_v26  ;;  %v2051_v48 = vmul.f32 %v5094_v8, %v5885_v39  ;;  %v2043_v28 = vmul.f32 %v5094_v8, %v5883_v7 }
 0x644   : > { %5101 = vrcp.f32 %v2023_v6  ;;  %4738 = vmatprep.subr.msk.mxu0 %vm1214_vm13, %v2051_v48  ;;  %4760 = vmatprep.subr.msk.mxu1 %vm345_vm1, %v2043_v28  ;;  %v1976_v22 = vpop.xlane.xlu0 %1975 }
 0x645   : > { %v5096_v41 = vpop.eup %5095  ;;  %v2000_v21 = vpop.xlane.xlu1 %1999  ;;  %4739 = vmatpush3.xpose.msk.msra.mxu0 %vm1214_vm13, %v2051_v48  ;;  %4761 = vmatpush3.xpose.msk.msra.mxu1 %vm345_vm1, %v2043_v28 }
 0x646   : > { %v2022_v61 = vadd.f32 %v2000_v21, %v1976_v22  ;;  %v2050_v9 = vmul.f32 %v5096_v41, %v5895_v35  ;;  %v2042_v40 = vmul.f32 %v5096_v41, %v5893_v46  ;;  %v4164_v21 = vld [vmem:[%s6606_s5 + $0x8] sm:$0xff] }
 0x648   : > { %5103 = vrcp.f32 %v2022_v61  ;;  %4740 = vmatprep.subr.msk.mxu0 %vm1214_vm13, %v2050_v9  ;;  %4762 = vmatprep.subr.msk.mxu1 %vm345_vm1, %v2042_v40  ;;  %v6017_v33 = vpop.permute.xlu0 %2454 }
 0x649   : > { %v5098_v7 = vpop.eup %5097  ;;  %4741 = vmatpush3.xpose.msk.msra.mxu0 %vm1214_vm13, %v2050_v9  ;;  %4763 = vmatpush3.xpose.msk.msra.mxu1 %vm345_vm1, %v2042_v40  ;;  %v5989_v42 = vpop.permute.xlu1 %2456 }
 0x64a   : > { %v2049_v39 = vmul.f32 %v5098_v7, %v5903_v31  ;;  %v2041_v29 = vmul.f32 %v5098_v7, %v5901_v34 }
 0x64c   : > { %4742 = vmatprep.subr.msk.mxu0 %vm1214_vm13, %v2049_v39  ;;  %4764 = vmatprep.subr.msk.mxu1 %vm345_vm1, %v2041_v29 }
 0x64d   : > { %v5100_v35 = vpop.eup %5099  ;;  %4743 = vmatpush3.xpose.msk.msra.mxu0 %vm1214_vm13, %v2049_v39  ;;  %4765 = vmatpush3.xpose.msk.msra.mxu1 %vm345_vm1, %v2041_v29  ;;  %v6012_v47 = vpop.permute.xlu1 %2458  ;;  %v1617_v39 = vld [vmem:[%s6606_s5] sm:$0xff] }
 0x64e   : > { %v2048_v46 = vmul.f32 %v5100_v35, %v5911_v24  ;;  %v2040_v44 = vmul.f32 %v5100_v35, %v5909_v27 }
 0x650   : > { %4744 = vmatprep.subr.msk.mxu0 %vm1214_vm13, %v2048_v46  ;;  %4766 = vmatprep.subr.msk.mxu1 %vm345_vm1, %v2040_v44 }
 0x651   : > { %v5102_v31 = vpop.eup %5101  ;;  %4745 = vmatpush3.xpose.msk.msra.mxu0 %vm1214_vm13, %v2048_v46  ;;  %4767 = vmatpush3.xpose.msk.msra.mxu1 %vm345_vm1, %v2040_v44  ;;  %v4168_v46 = vld [vmem:[%s6604_s3 + $0x48] sm:$0xff] }
 0x652   : > { %v2047_v34 = vmul.f32 %v5102_v31, %v5919_v18  ;;  %v2039_v45 = vmul.f32 %v5102_v31, %v5917_v36  ;;  %v4121_v36 = vld [vmem:[%s6605_s4 + $0x28] sm:$0xff]  ;;  %v6613_v18 = vmov 0.0  }
 0x654   : > { %4746 = vmatprep.subr.msk.mxu0 %vm1214_vm13, %v2047_v34  ;;  %4768 = vmatprep.subr.msk.mxu1 %vm345_vm1, %v2039_v45 }
 0x655   : > { %v5104_v24 = vpop.eup %5103  ;;  %4747 = vmatpush3.xpose.msk.msra.mxu0 %vm1214_vm13, %v2047_v34  ;;  %4769 = vmatpush3.xpose.msk.msra.mxu1 %vm345_vm1, %v2039_v45 }
 0x656   : > { %v2046_v27 = vmul.f32 %v5104_v24, %v5927_v10  ;;  %v2038_v14 = vmul.f32 %v5104_v24, %v5925_v38  ;;  %v4122_v38 = vld [vmem:[%s6605_s4 + $0x30] sm:$0xff]  ;;  %v4123_v10 = vld [vmem:[%s6605_s4 + $0x38] sm:$0xff] }
 0x658   : > { %4748 = vmatprep.subr.msk.mxu0 %vm1214_vm13, %v2046_v27  ;;  %4770 = vmatprep.subr.msk.mxu1 %vm345_vm1, %v2038_v14 }
 0x659   : > { %4749 = vmatpush3.xpose.msk.msra.mxu0 %vm1214_vm13, %v2046_v27  ;;  %4771 = vmatpush3.xpose.msk.msra.mxu1 %vm345_vm1, %v2038_v14 }
 0x65a   : > { %4800 = vmatprep.subr.mxu1 %v5622_v58  ;;  %4778 = vmatprep.subr.mxu0 %v6613_v18 }
 0x65c   : > { %4751 = vmatmul.mubr.msk.f32.vlgmr.msra.gmra.mxu0 %vm1214_vm13, %v4121_v36  ;;  %4773 = vmatmul.mubr.msk.f32.vlgmr.msra.gmra.mxu1 %vm345_vm1, %v5774_v59 }
 0x65d   : > { %4775 = vmatprep.mubr.msk.f32.mxu1 %vm345_vm1, %v5779_v63  ;;  %4801 = vmatpush3.msra.mxu1 %v5622_v58  ;;  %v6027_v58 = vpop.permute.xlu1 %2460 }
 0x65e   : > { %4802 = vmatprep.subr.mxu1 %v5632_v15  ;;  %4753 = vmatprep.mubr.msk.f32.mxu0 %vm1214_vm13, %v4122_v38 }
 0x65f   : > { %4803 = vmatpush3.msra.mxu1 %v5632_v15  ;;  %v6034_v15 = vpop.permute.xlu0 %2462 }
 0x660   : > { %4754 = vmatmul.mubr.msk.f32.gmra.mxu0 %vm1214_vm13, %v4123_v10  ;;  %4776 = vmatmul.mubr.msk.f32.gmra.mxu1 %vm345_vm1, %v5777_v62 }
 0x661   : > { %4804 = vmatprep.subr.mxu1 %v5610_v4  ;;  %4808 = vmatprep.mubr.msk.f32.mxu1 %vm955_vm12, %v6017_v33  ;;  %v6038_v59 = vpop.permute.xlu1 %2464 }
 0x662   : > { %4805 = vmatpush3.msra.mxu1 %v5610_v4  ;;  %4786 = vmatprep.mubr.msk.f32.mxu0 %vm5212_vm14, %v6613_v18 }
 0x663   : > { %4806 = vmatprep.subr.mxu1 %v5619_v57  ;;  %v6042_v4 = vpop.permute.xlu0 %2466 }
 0x664   : > { %4807 = vmatpush3.msra.mxu1 %v5619_v57 }
 0x665   : > { %4809 = vmatmul.mubr.msk.f32.vlgmr.msra.gmra.mxu1 %vm955_vm12, %v5989_v42  ;;  %v6048_v57 = vpop.permute.xlu1 %2468 }
 0x666   : > { %4811 = vmatprep.mubr.msk.f32.mxu1 %vm955_vm12, %v6012_v47 }
 0x669   : > { %4812 = vmatmul.mubr.msk.f32.gmra.mxu1 %vm955_vm12, %v6027_v58 }
 0x66a   : > { %4814 = vmatprep.mubr.msk.f32.mxu1 %vm955_vm12, %v6034_v15 }
 0x66d   : > { %4815 = vmatmul.mubr.msk.f32.gmra.mxu1 %vm955_vm12, %v6038_v59 }
 0x66e   : > { %4817 = vmatprep.mubr.msk.f32.mxu1 %vm955_vm12, %v6042_v4 }
 0x671   : > { %4818 = vmatmul.mubr.msk.f32.gmra.mxu1 %vm955_vm12, %v6048_v57 }
 0x71c   : > { %v4752_v62 = vpop.f32.mrf.mxu0  ;;  %v4774_v63 = vpop.f32.mrf.mxu1 }
 0x71d   : > { %v2283_v48 = vadd.f32 %v4774_v63, %v4752_v62 }
 0x71e   : > { %v2156_v5 = vpop.f32.mrf.mxu0  ;;  %v2277_v37 = vpop.f32.mrf.mxu1 }
 0x71f   : > { %v2278_v22 = vadd.f32 %v2277_v37, %v2156_v5 }
 0x720   : > { %v4755_v3 = vpop.f32.mrf.mxu0  ;;  %v4777_v16 = vpop.f32.mrf.mxu1 }
 0x721   : > { %v2293_v26 = vadd.f32 %v4777_v16, %v4755_v3 }
 0x722   : > { %v2166_v8 = vpop.f32.mrf.mxu0  ;;  %v2287_v13 = vpop.f32.mrf.mxu1 }
 0x723   : > { %v2288_v6 = vadd.f32 %v2287_v13, %v2166_v8  ;;  %4779 = vmatpush3.msra.mxu0 %v2293_v26 }
 0x724   : > { %4780 = vmatprep.subr.mxu0 %v6613_v18 }
 0x725   : > { %v6055_v28 = vpop.f32.mrf.mxu1  ;;  %4781 = vmatpush3.msra.mxu0 %v2288_v6 }
 0x726   : > { %4782 = vmatprep.subr.mxu0 %v6613_v18  ;;  %v2699_v26 = vsel %vm345_vm1, %v6055_v28, -inf }
 0x727   : > { %v6058_v41 = vpop.f32.mrf.mxu1  ;;  %4783 = vmatpush3.msra.mxu0 %v2283_v48 }
 0x728   : > { %4784 = vmatprep.subr.mxu0 %v6613_v18  ;;  %v2696_v13 = vsel %vm345_vm1, %v6058_v41, -inf }
 0x729   : > { %v6064_v61 = vpop.f32.mrf.mxu1  ;;  %4785 = vmatpush3.msra.mxu0 %v2278_v22 }
 0x72a   : > { %4789 = vmatprep.subr.mxu0 %v6613_v18  ;;  %4787 = vmatmul.mubr.msk.f32.vlgmr.msra.gmra.mxu0 %vm955_vm12, %v4164_v21  ;;  %v2705_v5 = vsel %vm345_vm1, %v6064_v61, -inf }
 0x72b   : > { %v6068_v9 = vpop.f32.mrf.mxu1  ;;  %4790 = vmatpush3.msra.mxu0 %v5801_v32  ;;  %4797 = vmatprep.mubr.msk.f32.mxu0 %vm5212_vm14, %v6613_v18  ;;  %v4170_v32 = vld [vmem:[%s6604_s3 + $0x58] sm:$0xff] }
 0x72c   : > { %4791 = vmatprep.subr.mxu0 %v6613_v18  ;;  %v2702_v3 = vsel %vm345_vm1, %v6068_v9, -inf }
 0x72d   : > { %v6074_v40 = vpop.f32.mrf.mxu1  ;;  %4792 = vmatpush3.msra.mxu0 %v5803_v25  ;;  %v4169_v25 = vld [vmem:[%s6604_s3 + $0x50] sm:$0xff] }
 0x72e   : > { %4793 = vmatprep.subr.mxu0 %v6613_v18 }
 0x72f   : > { %v6078_v7 = vpop.f32.mrf.mxu1  ;;  %4794 = vmatpush3.msra.mxu0 %v5797_v2 }
 0x730   : > { %4795 = vmatprep.subr.mxu0 %v6613_v18  ;;  %v2708_v62 = vsel %vm345_vm1, %v6078_v7, -inf }
 0x731   : > { %v6088_v29 = vpop.f32.mrf.mxu1  ;;  %4796 = vmatpush3.msra.mxu0 %v5799_v30  ;;  %v4167_v30 = vld [vmem:[%s6604_s3 + $0x40] sm:$0xff] }
 0x732   : > { %v2717_v2 = vsel %vm345_vm1, %v6088_v29, -inf  ;;  %4798 = vmatmul.mubr.msk.f32.vlgmr.msra.gmra.mxu0 %vm955_vm12, %v1617_v39  ;;  %4820 = vmatprep.subr.mxu0 %v4170_v32 }
 0x733   : > { %2718 = vmax.xlane.f32.xlu0 %v2717_v2  ;;  %v6097_v35 = vpop.f32.mrf.mxu1  ;;  %4821 = vmatpush3.msra.mxu0 %v4170_v32 }
 0x734   : > { %4828 = vmatprep.mubr.msk.f32.mxu0 %vm955_vm12, %v6017_v33  ;;  %4822 = vmatprep.subr.mxu0 %v4169_v25  ;;  %v2714_v44 = vsel %vm345_vm1, %v6097_v35, -inf }
 0x735   : > { %4823 = vmatpush3.msra.mxu0 %v4169_v25 }
 0x736   : > { %4824 = vmatprep.subr.mxu0 %v4168_v46 }
 0x737   : > { %2715 = vmax.xlane.f32.xlu0 %v2714_v44  ;;  %4825 = vmatpush3.msra.mxu0 %v4168_v46 }
 0x738   : > { %4826 = vmatprep.subr.mxu0 %v4167_v30 }
 0x739   : > { %4827 = vmatpush3.msra.mxu0 %v4167_v30 }
 0x73a   : > { %4829 = vmatmul.mubr.msk.f32.vlgmr.msra.gmra.mxu0 %vm955_vm12, %v5989_v42 }
 0x73b   : > { %4831 = vmatprep.mubr.msk.f32.mxu0 %vm955_vm12, %v6012_v47 }
 0x73e   : > { %4832 = vmatmul.mubr.msk.f32.gmra.mxu0 %vm955_vm12, %v6027_v58 }
 0x73f   : > { %4834 = vmatprep.mubr.msk.f32.mxu0 %vm955_vm12, %v6034_v15 }
 0x742   : > { %4835 = vmatmul.mubr.msk.f32.gmra.mxu0 %vm955_vm12, %v6038_v59 }
 0x743   : > { %4837 = vmatprep.mubr.msk.f32.mxu0 %vm955_vm12, %v6042_v4  ;;  %v2711_v4 = vsel %vm345_vm1, %v6074_v40, -inf }
 0x746   : > { %4838 = vmatmul.mubr.msk.f32.gmra.mxu0 %vm955_vm12, %v6048_v57 }
 0x747   : > { %4878 = vmatprep.mubr.msk.f32.mxu0 %vm345_vm1, %v5783_v1 }
 0x7bc   : > { %v2719_v6 = vpop.xlane.xlu0 %2718 }
 0x7c0   : > { %v2716_v48 = vpop.xlane.xlu0 %2715 }
 0x7ea   : > { %v2367_v31 = vpop.f32.mrf.mxu0 }
 0x7ec   : > { %v4788_v34 = vpop.f32.mrf.mxu0 }
 0x7f2   : > { %v2440_v45 = vpop.f32.mrf.mxu0 }
 0x7f3   : > { %v6125_v24 = vadd.f32 %v2440_v45, %v2367_v31 }
 0x7f4   : > { %v4799_v27 = vpop.f32.mrf.mxu0 }
 0x7fa   : > { %v6127_v14 = vpop.f32.mrf.mxu0 }
 0x7fb   : > { %v2723_v16 = vsel %vm1214_vm13, %v6127_v14, -inf }
 0x7fc   : > { %v6129_v42 = vpop.f32.mrf.mxu0 }
 0x7fd   : > { %v2720_v8 = vsel %vm1214_vm13, %v6129_v42, -inf }
 0x7fe   : > { %v6131_v36 = vpop.f32.mrf.mxu0 }
 0x7ff   : > { %v2729_v63 = vsel %vm1214_vm13, %v6131_v36, -inf }
 0x800   : > { %v6133_v38 = vpop.f32.mrf.mxu0 }
 0x801   : > { %v2726_v37 = vsel %vm1214_vm13, %v6133_v38, -inf }
 0x802   : > { %v4836_v10 = vpop.f32.mrf.mxu0 }
 0x803   : > { %v2735_v59 = vsel %vm1214_vm13, %v4836_v10, -inf }
 0x804   : > { %v6135_v47 = vpop.f32.mrf.mxu0 }
 0x805   : > { %v2732_v57 = vsel %vm1214_vm13, %v6135_v47, -inf }
 0x806   : > { %v4839_v33 = vpop.f32.mrf.mxu0 }
 0x807   : > { %v2741_v1 = vsel %vm1214_vm13, %v4839_v33, -inf }
 0x808   : > { %2742 = vmax.xlane.f32.xlu1 %v2741_v1  ;;  %v2687_v58 = vpop.f32.mrf.mxu0 }
 0x809   : > { %v2738_v15 = vsel %vm1214_vm13, %v2687_v58, -inf }
 0x80a   : > { %2739 = vmax.xlane.f32.xlu0 %v2738_v15 }
 0x80c   : > { %2736 = vmax.xlane.f32.xlu1 %v2735_v59 }
 0x80e   : > { %2712 = vmax.xlane.f32.xlu0 %v2711_v4 }
 0x810   : > { %2733 = vmax.xlane.f32.xlu1 %v2732_v57 }
 0x812   : > { %2709 = vmax.xlane.f32.xlu0 %v2708_v62 }
 0x814   : > { %2730 = vmax.xlane.f32.xlu1 %v2729_v63 }
 0x816   : > { %2706 = vmax.xlane.f32.xlu0 %v2705_v5 }
 0x818   : > { %2727 = vmax.xlane.f32.xlu1 %v2726_v37 }
 0x81a   : > { %2703 = vmax.xlane.f32.xlu0 %v2702_v3 }
 0x81c   : > { %2724 = vmax.xlane.f32.xlu1 %v2723_v16 }
 0x81e   : > { %2700 = vmax.xlane.f32.xlu0 %v2699_v26 }
 0x820   : > { %2721 = vmax.xlane.f32.xlu1 %v2720_v8 }
 0x822   : > { %2697 = vmax.xlane.f32.xlu0 %v2696_v13 }
 0x891   : > { %v2743_v22 = vpop.xlane.xlu1 %2742 }
 0x892   : > { %v2751_v21 = vmax.f32 %v2719_v6, %v2743_v22 }
 0x893   : > { %v2740_v39 = vpop.xlane.xlu0 %2739 }
 0x894   : > { %v2759_v32 = vsub.f32 %v6088_v29, %v2751_v21  ;;  %v2783_v25 = vsub.f32 %v4839_v33, %v2751_v21  ;;  %v2750_v2 = vmax.f32 %v2716_v48, %v2740_v39 }
 0x895   : > { %v2737_v46 = vpop.xlane.xlu1 %2736 }
 0x896   : > { %v2774_v30 = vmul.f32 1.442695, %v2759_v32  ;;  %v2798_v44 = vmul.f32 1.442695, %v2783_v25  ;;  %v2758_v31 = vsub.f32 %v6097_v35, %v2750_v2  ;;  %v2782_v34 = vsub.f32 %v2687_v58, %v2750_v2 }
 0x897   : > { %v2713_v45 = vpop.xlane.xlu0 %2712 }
 0x898   : > { %5105 = vpow2.f32 %v2774_v30  ;;  %v2772_v27 = vmul.f32 1.442695, %v2758_v31  ;;  %v2796_v1 = vmul.f32 1.442695, %v2782_v34  ;;  %v2749_v15 = vmax.f32 %v2713_v45, %v2737_v46 }
 0x899   : > { %5107 = vpow2.f32 %v2798_v44  ;;  %v2734_v59 = vpop.xlane.xlu1 %2733 }
 0x89a   : > { %5109 = vpow2.f32 %v2772_v27  ;;  %v2757_v4 = vsub.f32 %v6074_v40, %v2749_v15  ;;  %v2781_v57 = vsub.f32 %v4836_v10, %v2749_v15 }
 0x89b   : > { %5111 = vpow2.f32 %v2796_v1  ;;  %v2710_v29 = vpop.xlane.xlu0 %2709 }
 0x89c   : > { %v2770_v33 = vmul.f32 1.442695, %v2757_v4  ;;  %v2794_v62 = vmul.f32 1.442695, %v2781_v57  ;;  %v2748_v63 = vmax.f32 %v2710_v29, %v2734_v59 }
 0x89d   : > { %v2731_v5 = vpop.xlane.xlu1 %2730 }
 0x89e   : > { %5113 = vpow2.f32 %v2770_v33  ;;  %v2756_v35 = vsub.f32 %v6078_v7, %v2748_v63  ;;  %v2780_v58 = vsub.f32 %v6135_v47, %v2748_v63 }
 0x89f   : > { %5115 = vpow2.f32 %v2794_v62  ;;  %v2707_v37 = vpop.xlane.xlu0 %2706 }
 0x8a0   : > { %v2768_v3 = vmul.f32 1.442695, %v2756_v35  ;;  %v2792_v16 = vmul.f32 1.442695, %v2780_v58  ;;  %v2747_v26 = vmax.f32 %v2707_v37, %v2731_v5 }
 0x8a1   : > { %v2728_v8 = vpop.xlane.xlu1 %2727 }
 0x8a2   : > { %5117 = vpow2.f32 %v2768_v3  ;;  %v2755_v40 = vsub.f32 %v6064_v61, %v2747_v26  ;;  %v2779_v10 = vsub.f32 %v6131_v36, %v2747_v26 }
 0x8a3   : > { %5119 = vpow2.f32 %v2792_v16  ;;  %v2704_v13 = vpop.xlane.xlu0 %2703 }
 0x8a4   : > { %v2766_v6 = vmul.f32 1.442695, %v2755_v40  ;;  %v2790_v48 = vmul.f32 1.442695, %v2779_v10  ;;  %v2746_v22 = vmax.f32 %v2704_v13, %v2728_v8 }
 0x8a5   : > { %v6169_v21 = vpop.eup %5105  ;;  %v2725_v7 = vpop.xlane.xlu1 %2724 }
 0x8a6   : > { %v6171_v47 = vpop.eup %5107  ;;  %5121 = vpow2.f32 %v2766_v6  ;;  %v2754_v39 = vsub.f32 %v6068_v9, %v2746_v22  ;;  %v2778_v32 = vsub.f32 %v6133_v38, %v2746_v22  ;;  %v2821_v61 = vsel %vm345_vm1, %v6169_v21, 0.0 }
 0x8a7   : > { %v6177_v25 = vpop.eup %5109  ;;  %5123 = vpow2.f32 %v2790_v48  ;;  %v2845_v36 = vsel %vm1214_vm13, %v6171_v47, 0.0  ;;  %2822 = vadd.xlane.f32.xlu0 %v2821_v61  ;;  %v2701_v2 = vpop.xlane.xlu0 %2700 }
 0x8a8   : > { %v6181_v46 = vpop.eup %5111  ;;  %v2764_v30 = vmul.f32 1.442695, %v2754_v39  ;;  %v2788_v44 = vmul.f32 1.442695, %v2778_v32  ;;  %2846 = vadd.xlane.f32.xlu1 %v2845_v36  ;;  %v2745_v31 = vmax.f32 %v2701_v2, %v2725_v7  ;;  %v2818_v34 = vsel %vm345_vm1, %v6177_v25, 0.0  ;;  %v4171_v2 = vld [vmem:[%s6605_s4 + $0x40] sm:$0xff] }
 0x8a9   : > { %v2722_v27 = vpop.xlane.xlu1 %2721  ;;  %v2842_v1 = vsel %vm1214_vm13, %v6181_v46, 0.0  ;;  %4856 = vmatprep.mubr.msk.f32.mxu1 %vm1214_vm13, %v4171_v2 }
 0x8aa   : > { %5125 = vpow2.f32 %v2764_v30  ;;  %v2753_v9 = vsub.f32 %v6055_v28, %v2745_v31  ;;  %v2777_v38 = vsub.f32 %v6127_v14, %v2745_v31 }
 0x8ab   : > { %v6187_v45 = vpop.eup %5113  ;;  %5127 = vpow2.f32 %v2788_v44  ;;  %2819 = vadd.xlane.f32.xlu0 %v2818_v34  ;;  %v2698_v15 = vpop.xlane.xlu0 %2697 }
 0x8ac   : > { %v6191_v59 = vpop.eup %5115  ;;  %v2762_v4 = vmul.f32 1.442695, %v2753_v9  ;;  %v2786_v57 = vmul.f32 1.442695, %v2777_v38  ;;  %2843 = vadd.xlane.f32.xlu1 %v2842_v1  ;;  %v2744_v28 = vmax.f32 %v2698_v15, %v2722_v27  ;;  %v2815_v33 = vsel %vm345_vm1, %v6187_v45, 0.0 }
 0x8ad   : > { %v2839_v63 = vsel %vm1214_vm13, %v6191_v59, 0.0 }
 0x8ae   : > { %5129 = vpow2.f32 %v2762_v4  ;;  %v2752_v14 = vsub.f32 %v6058_v41, %v2744_v28  ;;  %v2776_v29 = vsub.f32 %v6129_v42, %v2744_v28 }
 0x8af   : > { %v6197_v62 = vpop.eup %5117  ;;  %5131 = vpow2.f32 %v2786_v57  ;;  %2816 = vadd.xlane.f32.xlu0 %v2815_v33 }
 0x8b0   : > { %v6201_v5 = vpop.eup %5119  ;;  %v2760_v35 = vmul.f32 1.442695, %v2752_v14  ;;  %v2784_v58 = vmul.f32 1.442695, %v2776_v29  ;;  %2840 = vadd.xlane.f32.xlu1 %v2839_v63  ;;  %v2812_v41 = vsel %vm345_vm1, %v6197_v62, 0.0 }
 0x8b1   : > { %v2836_v37 = vsel %vm1214_vm13, %v6201_v5, 0.0 }
 0x8b2   : > { %5133 = vpow2.f32 %v2760_v35 }
 0x8b3   : > { %v6205_v42 = vpop.eup %5121  ;;  %5135 = vpow2.f32 %v2784_v58  ;;  %2813 = vadd.xlane.f32.xlu0 %v2812_v41 }
 0x8b4   : > { %v6209_v3 = vpop.eup %5123  ;;  %2837 = vadd.xlane.f32.xlu1 %v2836_v37  ;;  %v2809_v16 = vsel %vm345_vm1, %v6205_v42, 0.0 }
 0x8b5   : > { %v2833_v8 = vsel %vm1214_vm13, %v6209_v3, 0.0 }
 0x8b7   : > { %v6213_v26 = vpop.eup %5125  ;;  %2810 = vadd.xlane.f32.xlu0 %v2809_v16 }
 0x8b8   : > { %v6217_v40 = vpop.eup %5127  ;;  %2834 = vadd.xlane.f32.xlu1 %v2833_v8  ;;  %v2806_v10 = vsel %vm345_vm1, %v6213_v26, 0.0 }
 0x8b9   : > { %v2830_v6 = vsel %vm1214_vm13, %v6217_v40, 0.0 }
 0x8bb   : > { %v6221_v13 = vpop.eup %5129  ;;  %2807 = vadd.xlane.f32.xlu0 %v2806_v10 }
 0x8bc   : > { %v6225_v48 = vpop.eup %5131  ;;  %2831 = vadd.xlane.f32.xlu1 %v2830_v6  ;;  %v2803_v22 = vsel %vm345_vm1, %v6221_v13, 0.0 }
 0x8bd   : > { %v2827_v39 = vsel %vm1214_vm13, %v6225_v48, 0.0 }
 0x8bf   : > { %v6229_v7 = vpop.eup %5133  ;;  %2804 = vadd.xlane.f32.xlu0 %v2803_v22 }
 0x8c0   : > { %v6233_v32 = vpop.eup %5135  ;;  %2828 = vadd.xlane.f32.xlu1 %v2827_v39  ;;  %v2800_v61 = vsel %vm345_vm1, %v6229_v7, 0.0 }
 0x8c1   : > { %v2824_v36 = vsel %vm1214_vm13, %v6233_v32, 0.0 }
 0x8c3   : > { %2801 = vadd.xlane.f32.xlu0 %v2800_v61 }
 0x8c4   : > { %2825 = vadd.xlane.f32.xlu1 %v2824_v36 }
 0x8d5   : > { %3210 = vrot.lane.b32.xlu1 %v5319_v49, %s5213_s19 }
 0x8d9   : > { %3212 = vrot.lane.b32.xlu1 %v5327_v52, %s5213_s19  ;;  %3208 = vrot.lane.b32.xlu0 %v5321_v50, %s5213_s19 }
 0x8dd   : > { %3214 = vrot.lane.b32.xlu1 %v5325_v51, %s5213_s19  ;;  %3216 = vrot.lane.b32.xlu0 %v5331_v54, %s5213_s19 }
 0x8e1   : > { %3218 = vrot.lane.b32.xlu1 %v5329_v53, %s5213_s19  ;;  %3220 = vrot.lane.b32.xlu0 %v5335_v56, %s5213_s19 }
 0x8e5   : > { %3222 = vrot.lane.b32.xlu1 %v5333_v55, %s5213_s19 }
 0x930   : > { %v2823_v49 = vpop.xlane.xlu0 %2822 }
 0x931   : > { %v2847_v52 = vpop.xlane.xlu1 %2846 }
 0x932   : > { %v2855_v30 = vadd.f32 %v2847_v52, %v2823_v49 }
 0x934   : > { %5137 = vrcp.f32 %v2855_v30  ;;  %v2820_v50 = vpop.xlane.xlu0 %2819 }
 0x935   : > { %v2844_v51 = vpop.xlane.xlu1 %2843 }
 0x936   : > { %v2854_v44 = vadd.f32 %v2844_v51, %v2820_v50 }
 0x938   : > { %5139 = vrcp.f32 %v2854_v44  ;;  %v2817_v54 = vpop.xlane.xlu0 %2816 }
 0x939   : > { %v2841_v53 = vpop.xlane.xlu1 %2840 }
 0x93a   : > { %v2853_v31 = vadd.f32 %v2841_v53, %v2817_v54 }
 0x93c   : > { %5141 = vrcp.f32 %v2853_v31  ;;  %v2814_v56 = vpop.xlane.xlu0 %2813 }
 0x93d   : > { %v2838_v9 = vpop.xlane.xlu1 %2837 }
 0x93e   : > { %v2852_v38 = vadd.f32 %v2838_v9, %v2814_v56 }
 0x940   : > { %5143 = vrcp.f32 %v2852_v38  ;;  %v2811_v34 = vpop.xlane.xlu0 %2810 }
 0x941   : > { %v5138_v27 = vpop.eup %5137  ;;  %v2835_v1 = vpop.xlane.xlu1 %2834 }
 0x942   : > { %v2851_v55 = vadd.f32 %v2835_v1, %v2811_v34  ;;  %v2879_v15 = vmul.f32 %v5138_v27, %v6171_v47  ;;  %v2871_v4 = vmul.f32 %v5138_v27, %v6169_v21  ;;  %v4215_v27 = vld [vmem:[%s6606_s5 + $0x10] sm:$0xff]  ;;  %v4220_v1 = vld [vmem:[%s6604_s3 + $0x78] sm:$0xff] }
 0x944   : > { %5145 = vrcp.f32 %v2851_v55  ;;  %4840 = vmatprep.subr.msk.mxu1 %vm1214_vm13, %v2879_v15  ;;  %4862 = vmatprep.subr.msk.mxu0 %vm345_vm1, %v2871_v4  ;;  %v2808_v57 = vpop.xlane.xlu0 %2807 }
 0x945   : > { %v5140_v28 = vpop.eup %5139  ;;  %v2832_v14 = vpop.xlane.xlu1 %2831  ;;  %4841 = vmatpush3.xpose.msk.msra.mxu1 %vm1214_vm13, %v2879_v15  ;;  %4863 = vmatpush3.xpose.msk.msra.mxu0 %vm345_vm1, %v2871_v4  ;;  %v4219_v15 = vld [vmem:[%s6604_s3 + $0x70] sm:$0xff] }
 0x946   : > { %v2850_v29 = vadd.f32 %v2832_v14, %v2808_v57  ;;  %v2878_v33 = vmul.f32 %v5140_v28, %v6181_v46  ;;  %v2870_v63 = vmul.f32 %v5140_v28, %v6177_v25  ;;  %v4218_v57 = vld [vmem:[%s6604_s3 + $0x68] sm:$0xff]  ;;  %v4217_v14 = vld [vmem:[%s6604_s3 + $0x60] sm:$0xff] }
 0x948   : > { %5147 = vrcp.f32 %v2850_v29  ;;  %4842 = vmatprep.subr.msk.mxu1 %vm1214_vm13, %v2878_v33  ;;  %4864 = vmatprep.subr.msk.mxu0 %vm345_vm1, %v2870_v63  ;;  %v2805_v21 = vpop.xlane.xlu0 %2804 }
 0x949   : > { %v5142_v47 = vpop.eup %5141  ;;  %v2829_v35 = vpop.xlane.xlu1 %2828  ;;  %4843 = vmatpush3.xpose.msk.msra.mxu1 %vm1214_vm13, %v2878_v33  ;;  %4865 = vmatpush3.xpose.msk.msra.mxu0 %vm345_vm1, %v2870_v63 }
 0x94a   : > { %v2849_v58 = vadd.f32 %v2829_v35, %v2805_v21  ;;  %v2877_v41 = vmul.f32 %v5142_v47, %v6191_v59  ;;  %v2869_v37 = vmul.f32 %v5142_v47, %v6187_v45 }
 0x94c   : > { %5149 = vrcp.f32 %v2849_v58  ;;  %4844 = vmatprep.subr.msk.mxu1 %vm1214_vm13, %v2877_v41  ;;  %4866 = vmatprep.subr.msk.mxu0 %vm345_vm1, %v2869_v37  ;;  %v2802_v25 = vpop.xlane.xlu0 %2801 }
 0x94d   : > { %v5144_v46 = vpop.eup %5143  ;;  %v2826_v16 = vpop.xlane.xlu1 %2825  ;;  %4845 = vmatpush3.xpose.msk.msra.mxu1 %vm1214_vm13, %v2877_v41  ;;  %4867 = vmatpush3.xpose.msk.msra.mxu0 %vm345_vm1, %v2869_v37 }
 0x94e   : > { %v2848_v8 = vadd.f32 %v2826_v16, %v2802_v25  ;;  %v2876_v10 = vmul.f32 %v5144_v46, %v6201_v5  ;;  %v2868_v6 = vmul.f32 %v5144_v46, %v6197_v62 }
 0x950   : > { %5151 = vrcp.f32 %v2848_v8  ;;  %4846 = vmatprep.subr.msk.mxu1 %vm1214_vm13, %v2876_v10  ;;  %4868 = vmatprep.subr.msk.mxu0 %vm345_vm1, %v2868_v6  ;;  %v3209_v49 = vpop.permute.xlu0 %3208 }
 0x951   : > { %v5146_v45 = vpop.eup %5145  ;;  %4847 = vmatpush3.xpose.msk.msra.mxu1 %vm1214_vm13, %v2876_v10  ;;  %4869 = vmatpush3.xpose.msk.msra.mxu0 %vm345_vm1, %v2868_v6  ;;  %v6295_v2 = vpop.permute.xlu1 %3210 }
 0x952   : > { %v2875_v59 = vmul.f32 %v5146_v45, %v6209_v3  ;;  %v2867_v22 = vmul.f32 %v5146_v45, %v6205_v42 }
 0x954   : > { %4848 = vmatprep.subr.msk.mxu1 %vm1214_vm13, %v2875_v59  ;;  %4870 = vmatprep.subr.msk.mxu0 %vm345_vm1, %v2867_v22 }
 0x955   : > { %v5148_v5 = vpop.eup %5147  ;;  %4849 = vmatpush3.xpose.msk.msra.mxu1 %vm1214_vm13, %v2875_v59  ;;  %4871 = vmatpush3.xpose.msk.msra.mxu0 %vm345_vm1, %v2867_v22 }
 0x956   : > { %v2874_v62 = vmul.f32 %v5148_v5, %v6217_v40  ;;  %v2866_v39 = vmul.f32 %v5148_v5, %v6213_v26 }
 0x958   : > { %4850 = vmatprep.subr.msk.mxu1 %vm1214_vm13, %v2874_v62  ;;  %4872 = vmatprep.subr.msk.mxu0 %vm345_vm1, %v2866_v39 }
 0x959   : > { %v5150_v3 = vpop.eup %5149  ;;  %4851 = vmatpush3.xpose.msk.msra.mxu1 %vm1214_vm13, %v2874_v62  ;;  %4873 = vmatpush3.xpose.msk.msra.mxu0 %vm345_vm1, %v2866_v39 }
 0x95a   : > { %v2873_v42 = vmul.f32 %v5150_v3, %v6225_v48  ;;  %v2865_v61 = vmul.f32 %v5150_v3, %v6221_v13  ;;  %v4172_v13 = vld [vmem:[%s6605_s4 + $0x48] sm:$0xff]  ;;  %v4173_v48 = vld [vmem:[%s6605_s4 + $0x50] sm:$0xff] }
 0x95c   : > { %4852 = vmatprep.subr.msk.mxu1 %vm1214_vm13, %v2873_v42  ;;  %4874 = vmatprep.subr.msk.mxu0 %vm345_vm1, %v2865_v61 }
 0x95d   : > { %v5152_v40 = vpop.eup %5151  ;;  %4853 = vmatpush3.xpose.msk.msra.mxu1 %vm1214_vm13, %v2873_v42  ;;  %4875 = vmatpush3.xpose.msk.msra.mxu0 %vm345_vm1, %v2865_v61 }
 0x95e   : > { %v2872_v26 = vmul.f32 %v5152_v40, %v6233_v32  ;;  %v2864_v36 = vmul.f32 %v5152_v40, %v6229_v7  ;;  %v4174_v7 = vld [vmem:[%s6605_s4 + $0x58] sm:$0xff]  ;;  %v6318_v32 = vpop.permute.xlu1 %3212 }
 0x960   : > { %4854 = vmatprep.subr.msk.mxu1 %vm1214_vm13, %v2872_v26  ;;  %4876 = vmatprep.subr.msk.mxu0 %vm345_vm1, %v2864_v36 }
 0x961   : > { %4855 = vmatpush3.xpose.msk.msra.mxu1 %vm1214_vm13, %v2872_v26  ;;  %4877 = vmatpush3.xpose.msk.msra.mxu0 %vm345_vm1, %v2864_v36 }
 0x962   : > { %4895 = vmatprep.subr.mxu0 %v5649_v11  ;;  %4884 = vmatprep.subr.mxu1 %v6613_v18 }
 0x964   : > { %4857 = vmatmul.mubr.msk.f32.vlgmr.msra.gmra.mxu1 %vm1214_vm13, %v4172_v13  ;;  %4879 = vmatmul.mubr.msk.f32.vlgmr.msra.gmra.mxu0 %vm345_vm1, %v5781_v17 }
 0x965   : > { %4881 = vmatprep.mubr.msk.f32.mxu0 %vm345_vm1, %v5787_v20  ;;  %4896 = vmatpush3.msra.mxu0 %v5649_v11  ;;  %v3215_v11 = vpop.permute.xlu1 %3214 }
 0x966   : > { %4897 = vmatprep.subr.mxu0 %v5660_v12  ;;  %4859 = vmatprep.mubr.msk.f32.mxu1 %vm1214_vm13, %v4173_v48 }
 0x967   : > { %4898 = vmatpush3.msra.mxu0 %v5660_v12  ;;  %v3217_v12 = vpop.permute.xlu0 %3216 }
 0x968   : > { %4860 = vmatmul.mubr.msk.f32.gmra.mxu1 %vm1214_vm13, %v4174_v7  ;;  %4882 = vmatmul.mubr.msk.f32.gmra.mxu0 %vm345_vm1, %v5785_v43 }
 0x969   : > { %4899 = vmatprep.subr.mxu0 %v5635_v60  ;;  %4903 = vmatprep.mubr.msk.f32.mxu0 %vm955_vm12, %v3209_v49  ;;  %v3219_v17 = vpop.permute.xlu1 %3218 }
 0x96a   : > { %4900 = vmatpush3.msra.mxu0 %v5635_v60  ;;  %4892 = vmatprep.mubr.msk.f32.mxu1 %vm5212_vm14, %v6613_v18 }
 0x96b   : > { %4901 = vmatprep.subr.mxu0 %v5646_v0  ;;  %v3221_v60 = vpop.permute.xlu0 %3220 }
 0x96c   : > { %4902 = vmatpush3.msra.mxu0 %v5646_v0 }
 0x96d   : > { %4904 = vmatmul.mubr.msk.f32.vlgmr.msra.gmra.mxu0 %vm955_vm12, %v6295_v2  ;;  %v3223_v43 = vpop.permute.xlu1 %3222 }
 0x96e   : > { %4906 = vmatprep.mubr.msk.f32.mxu0 %vm955_vm12, %v6318_v32 }
 0x971   : > { %4907 = vmatmul.mubr.msk.f32.gmra.mxu0 %vm955_vm12, %v3215_v11 }
 0x972   : > { %4909 = vmatprep.mubr.msk.f32.mxu0 %vm955_vm12, %v3217_v12 }
 0x975   : > { %4910 = vmatmul.mubr.msk.f32.gmra.mxu0 %vm955_vm12, %v3219_v17 }
 0x976   : > { %4912 = vmatprep.mubr.msk.f32.mxu0 %vm955_vm12, %v3221_v60 }
 0x979   : > { %4913 = vmatmul.mubr.msk.f32.gmra.mxu0 %vm955_vm12, %v3223_v43 }
 0xa24   : > { %v4858_v0 = vpop.f32.mrf.mxu1  ;;  %v4880_v20 = vpop.f32.mrf.mxu0 }
 0xa25   : > { %v3109_v56 = vadd.f32 %v4880_v20, %v4858_v0 }
 0xa26   : > { %v2982_v52 = vpop.f32.mrf.mxu1  ;;  %v3103_v30 = vpop.f32.mrf.mxu0 }
 0xa27   : > { %v3104_v38 = vadd.f32 %v3103_v30, %v2982_v52 }
 0xa28   : > { %v4861_v50 = vpop.f32.mrf.mxu1  ;;  %v4883_v51 = vpop.f32.mrf.mxu0 }
 0xa29   : > { %v3119_v44 = vadd.f32 %v4883_v51, %v4861_v50 }
 0xa2a   : > { %v2992_v54 = vpop.f32.mrf.mxu1  ;;  %v3113_v53 = vpop.f32.mrf.mxu0 }
 0xa2b   : > { %v3114_v31 = vadd.f32 %v3113_v53, %v2992_v54  ;;  %4885 = vmatpush3.msra.mxu1 %v3119_v44 }
 0xa2c   : > { %4886 = vmatprep.subr.mxu1 %v6613_v18 }
 0xa2d   : > { %v6343_v9 = vpop.f32.mrf.mxu0  ;;  %4887 = vmatpush3.msra.mxu1 %v3114_v31 }
 0xa2e   : > { %4888 = vmatprep.subr.mxu1 %v6613_v18  ;;  %v3453_v26 = vsel %vm345_vm1, %v6343_v9, -inf }
 0xa2f   : > { %v6346_v34 = vpop.f32.mrf.mxu0  ;;  %4889 = vmatpush3.msra.mxu1 %v3109_v56 }
 0xa30   : > { %4890 = vmatprep.subr.mxu1 %v6613_v18 }
 0xa31   : > { %v6355_v55 = vpop.f32.mrf.mxu0  ;;  %4891 = vmatpush3.msra.mxu1 %v3104_v38 }
 0xa32   : > { %4893 = vmatmul.mubr.msk.f32.vlgmr.msra.gmra.mxu1 %vm955_vm12, %v4215_v27  ;;  %4915 = vmatprep.subr.mxu1 %v4220_v1  ;;  %v3459_v3 = vsel %vm345_vm1, %v6355_v55, -inf }
 0xa33   : > { %v6361_v4 = vpop.f32.mrf.mxu0  ;;  %4916 = vmatpush3.msra.mxu1 %v4220_v1  ;;  %4923 = vmatprep.mubr.msk.f32.mxu1 %vm955_vm12, %v3209_v49 }
 0xa34   : > { %4917 = vmatprep.subr.mxu1 %v4219_v15  ;;  %v3456_v61 = vsel %vm345_vm1, %v6361_v4, -inf }
 0xa35   : > { %v6367_v28 = vpop.f32.mrf.mxu0  ;;  %4918 = vmatpush3.msra.mxu1 %v4219_v15 }
 0xa36   : > { %4919 = vmatprep.subr.mxu1 %v4218_v57  ;;  %v3465_v22 = vsel %vm345_vm1, %v6367_v28, -inf }
 0xa37   : > { %v6372_v29 = vpop.f32.mrf.mxu0  ;;  %4920 = vmatpush3.msra.mxu1 %v4218_v57 }
 0xa38   : > { %4921 = vmatprep.subr.mxu1 %v4217_v14  ;;  %v3462_v62 = vsel %vm345_vm1, %v6372_v29, -inf }
 0xa39   : > { %v6374_v33 = vpop.f32.mrf.mxu0  ;;  %4922 = vmatpush3.msra.mxu1 %v4217_v14 }
 0xa3a   : > { %4924 = vmatmul.mubr.msk.f32.vlgmr.msra.gmra.mxu1 %vm955_vm12, %v6295_v2  ;;  %v3471_v63 = vsel %vm345_vm1, %v6374_v33, -inf  ;;  %v3450_v2 = vsel %vm345_vm1, %v6346_v34, -inf }
 0xa3b   : > { %3472 = vmax.xlane.f32.xlu0 %v3471_v63  ;;  %v6380_v21 = vpop.f32.mrf.mxu0  ;;  %4926 = vmatprep.mubr.msk.f32.mxu1 %vm955_vm12, %v6318_v32 }
 0xa3c   : > { %v3468_v47 = vsel %vm345_vm1, %v6380_v21, -inf }
 0xa3e   : > { %4927 = vmatmul.mubr.msk.f32.gmra.mxu1 %vm955_vm12, %v3215_v11 }
 0xa3f   : > { %3469 = vmax.xlane.f32.xlu0 %v3468_v47  ;;  %4929 = vmatprep.mubr.msk.f32.mxu1 %vm955_vm12, %v3217_v12 }
 0xa42   : > { %4930 = vmatmul.mubr.msk.f32.gmra.mxu1 %vm955_vm12, %v3219_v17 }
 0xa43   : > { %4932 = vmatprep.mubr.msk.f32.mxu1 %vm955_vm12, %v3221_v60 }
 0xa46   : > { %4933 = vmatmul.mubr.msk.f32.gmra.mxu1 %vm955_vm12, %v3223_v43 }
 0xa47   : > { %4973 = vmatprep.mubr.msk.f32.mxu1 %vm345_vm1, %v5791_v23 }
 0xac4   : > { %v3473_v13 = vpop.xlane.xlu0 %3472 }
 0xac8   : > { %v3470_v48 = vpop.xlane.xlu0 %3469 }
 0xaf2   : > { %v3193_v35 = vpop.f32.mrf.mxu1 }
 0xaf3   : > { %v6394_v58 = vadd.f32 %v3193_v35, %v6125_v24 }
 0xaf4   : > { %v4894_v41 = vpop.f32.mrf.mxu1 }
 0xafa   : > { %v6396_v37 = vpop.f32.mrf.mxu1 }
 0xafb   : > { %v3477_v40 = vsel %vm1214_vm13, %v6396_v37, -inf }
 0xafc   : > { %v6398_v25 = vpop.f32.mrf.mxu1 }
 0xafd   : > { %v3474_v36 = vsel %vm1214_vm13, %v6398_v25, -inf }
 0xafe   : > { %v6400_v46 = vpop.f32.mrf.mxu1 }
 0xaff   : > { %v3483_v39 = vsel %vm1214_vm13, %v6400_v46, -inf }
 0xb00   : > { %v6402_v16 = vpop.f32.mrf.mxu1 }
 0xb01   : > { %v3480_v42 = vsel %vm1214_vm13, %v6402_v16, -inf }
 0xb02   : > { %v4931_v8 = vpop.f32.mrf.mxu1 }
 0xb03   : > { %v3489_v59 = vsel %vm1214_vm13, %v4931_v8, -inf }
 0xb04   : > { %v6404_v10 = vpop.f32.mrf.mxu1 }
 0xb05   : > { %v3486_v5 = vsel %vm1214_vm13, %v6404_v10, -inf }
 0xb06   : > { %v4934_v6 = vpop.f32.mrf.mxu1 }
 0xb07   : > { %v3495_v45 = vsel %vm1214_vm13, %v4934_v6, -inf }
 0xb08   : > { %3496 = vmax.xlane.f32.xlu1 %v3495_v45  ;;  %v3441_v23 = vpop.f32.mrf.mxu1 }
 0xb09   : > { %v3492_v24 = vsel %vm1214_vm13, %v3441_v23, -inf }
 0xb0a   : > { %3493 = vmax.xlane.f32.xlu0 %v3492_v24 }
 0xb0c   : > { %3490 = vmax.xlane.f32.xlu1 %v3489_v59 }
 0xb0e   : > { %3466 = vmax.xlane.f32.xlu0 %v3465_v22 }
 0xb10   : > { %3487 = vmax.xlane.f32.xlu1 %v3486_v5 }
 0xb12   : > { %3463 = vmax.xlane.f32.xlu0 %v3462_v62 }
 0xb14   : > { %3484 = vmax.xlane.f32.xlu1 %v3483_v39 }
 0xb16   : > { %3460 = vmax.xlane.f32.xlu0 %v3459_v3 }
 0xb18   : > { %3481 = vmax.xlane.f32.xlu1 %v3480_v42 }
 0xb1a   : > { %3457 = vmax.xlane.f32.xlu0 %v3456_v61 }
 0xb1c   : > { %3478 = vmax.xlane.f32.xlu1 %v3477_v40 }
 0xb1e   : > { %3454 = vmax.xlane.f32.xlu0 %v3453_v26 }
 0xb20   : > { %3475 = vmax.xlane.f32.xlu1 %v3474_v36 }
 0xb22   : > { %3451 = vmax.xlane.f32.xlu0 %v3450_v2 }
 0xb91   : > { %v3497_v7 = vpop.xlane.xlu1 %3496 }
 0xb92   : > { %v3505_v32 = vmax.f32 %v3473_v13, %v3497_v7 }
 0xb93   : > { %v3494_v49 = vpop.xlane.xlu0 %3493 }
 0xb94   : > { %v3513_v11 = vsub.f32 %v6374_v33, %v3505_v32  ;;  %v3537_v12 = vsub.f32 %v4934_v6, %v3505_v32  ;;  %v3504_v17 = vmax.f32 %v3470_v48, %v3494_v49 }
 0xb95   : > { %v3491_v60 = vpop.xlane.xlu1 %3490 }
 0xb96   : > { %v3528_v43 = vmul.f32 1.442695, %v3513_v11  ;;  %v3552_v0 = vmul.f32 1.442695, %v3537_v12  ;;  %v3512_v20 = vsub.f32 %v6380_v21, %v3504_v17  ;;  %v3536_v52 = vsub.f32 %v3441_v23, %v3504_v17 }
 0xb97   : > { %v3467_v30 = vpop.xlane.xlu0 %3466 }
 0xb98   : > { %5153 = vpow2.f32 %v3528_v43  ;;  %v3526_v50 = vmul.f32 1.442695, %v3512_v20  ;;  %v3550_v51 = vmul.f32 1.442695, %v3536_v52  ;;  %v3503_v44 = vmax.f32 %v3467_v30, %v3491_v60 }
 0xb99   : > { %5155 = vpow2.f32 %v3552_v0  ;;  %v3488_v54 = vpop.xlane.xlu1 %3487 }
 0xb9a   : > { %5157 = vpow2.f32 %v3526_v50  ;;  %v3511_v53 = vsub.f32 %v6367_v28, %v3503_v44  ;;  %v3535_v31 = vsub.f32 %v4931_v8, %v3503_v44 }
 0xb9b   : > { %5159 = vpow2.f32 %v3550_v51  ;;  %v3464_v56 = vpop.xlane.xlu0 %3463 }
 0xb9c   : > { %v3524_v38 = vmul.f32 1.442695, %v3511_v53  ;;  %v3548_v27 = vmul.f32 1.442695, %v3535_v31  ;;  %v3502_v1 = vmax.f32 %v3464_v56, %v3488_v54 }
 0xb9d   : > { %v3485_v15 = vpop.xlane.xlu1 %3484 }
 0xb9e   : > { %5161 = vpow2.f32 %v3524_v38  ;;  %v3510_v57 = vsub.f32 %v6372_v29, %v3502_v1  ;;  %v3534_v14 = vsub.f32 %v6404_v10, %v3502_v1 }
 0xb9f   : > { %5163 = vpow2.f32 %v3548_v27  ;;  %v3461_v33 = vpop.xlane.xlu0 %3460 }
 0xba0   : > { %v3522_v63 = vmul.f32 1.442695, %v3510_v57  ;;  %v3546_v21 = vmul.f32 1.442695, %v3534_v14  ;;  %v3501_v47 = vmax.f32 %v3461_v33, %v3485_v15  ;;  %v4221_v33 = vld [vmem:[%s6605_s4 + $0x60] sm:$0xff] }
 0xba1   : > { %v3482_v35 = vpop.xlane.xlu1 %3481  ;;  %4951 = vmatprep.mubr.msk.f32.mxu0 %vm1214_vm13, %v4221_v33 }
 0xba2   : > { %5165 = vpow2.f32 %v3522_v63  ;;  %v3509_v28 = vsub.f32 %v6355_v55, %v3501_v47  ;;  %v3533_v41 = vsub.f32 %v6400_v46, %v3501_v47 }
 0xba3   : > { %5167 = vpow2.f32 %v3546_v21  ;;  %v3458_v8 = vpop.xlane.xlu0 %3457 }
 0xba4   : > { %v3520_v6 = vmul.f32 1.442695, %v3509_v28  ;;  %v3544_v45 = vmul.f32 1.442695, %v3533_v41  ;;  %v3500_v23 = vmax.f32 %v3458_v8, %v3482_v35 }
 0xba5   : > { %v6438_v24 = vpop.eup %5153  ;;  %v3479_v29 = vpop.xlane.xlu1 %3478 }
 0xba6   : > { %v6440_v10 = vpop.eup %5155  ;;  %5169 = vpow2.f32 %v3520_v6  ;;  %v3508_v59 = vsub.f32 %v6361_v4, %v3500_v23  ;;  %v3532_v22 = vsub.f32 %v6402_v16, %v3500_v23  ;;  %v3575_v55 = vsel %vm345_vm1, %v6438_v24, 0.0 }
 0xba7   : > { %v6446_v5 = vpop.eup %5157  ;;  %5171 = vpow2.f32 %v3544_v45  ;;  %v3599_v46 = vsel %vm1214_vm13, %v6440_v10, 0.0  ;;  %3576 = vadd.xlane.f32.xlu0 %v3575_v55  ;;  %v3455_v62 = vpop.xlane.xlu0 %3454 }
 0xba8   : > { %v6450_v39 = vpop.eup %5159  ;;  %v3518_v3 = vmul.f32 1.442695, %v3508_v59  ;;  %v3542_v42 = vmul.f32 1.442695, %v3532_v22  ;;  %3600 = vadd.xlane.f32.xlu1 %v3599_v46  ;;  %v3499_v61 = vmax.f32 %v3455_v62, %v3479_v29  ;;  %v3572_v40 = vsel %vm345_vm1, %v6446_v5, 0.0 }
 0xba9   : > { %v3476_v36 = vpop.xlane.xlu1 %3475  ;;  %v3596_v2 = vsel %vm1214_vm13, %v6450_v39, 0.0 }
 0xbaa   : > { %5173 = vpow2.f32 %v3518_v3  ;;  %v3507_v4 = vsub.f32 %v6343_v9, %v3499_v61  ;;  %v3531_v16 = vsub.f32 %v6396_v37, %v3499_v61 }
 0xbab   : > { %v6456_v26 = vpop.eup %5161  ;;  %5175 = vpow2.f32 %v3542_v42  ;;  %3573 = vadd.xlane.f32.xlu0 %v3572_v40  ;;  %v3452_v13 = vpop.xlane.xlu0 %3451 }
 0xbac   : > { %v6460_v48 = vpop.eup %5163  ;;  %v3516_v7 = vmul.f32 1.442695, %v3507_v4  ;;  %v3540_v32 = vmul.f32 1.442695, %v3531_v16  ;;  %3597 = vadd.xlane.f32.xlu1 %v3596_v2  ;;  %v3498_v9 = vmax.f32 %v3452_v13, %v3476_v36  ;;  %v3569_v11 = vsel %vm345_vm1, %v6456_v26, 0.0 }
 0xbad   : > { %v3593_v17 = vsel %vm1214_vm13, %v6460_v48, 0.0 }
 0xbae   : > { %5177 = vpow2.f32 %v3516_v7  ;;  %v3506_v37 = vsub.f32 %v6346_v34, %v3498_v9  ;;  %v3530_v49 = vsub.f32 %v6398_v25, %v3498_v9 }
 0xbaf   : > { %v6466_v12 = vpop.eup %5165  ;;  %5179 = vpow2.f32 %v3540_v32  ;;  %3570 = vadd.xlane.f32.xlu0 %v3569_v11 }
 0xbb0   : > { %v6470_v60 = vpop.eup %5167  ;;  %v3514_v43 = vmul.f32 1.442695, %v3506_v37  ;;  %v3538_v0 = vmul.f32 1.442695, %v3530_v49  ;;  %3594 = vadd.xlane.f32.xlu1 %v3593_v17  ;;  %v3566_v34 = vsel %vm345_vm1, %v6466_v12, 0.0 }
 0xbb1   : > { %v3590_v20 = vsel %vm1214_vm13, %v6470_v60, 0.0 }
 0xbb2   : > { %5181 = vpow2.f32 %v3514_v43 }
 0xbb3   : > { %v6474_v25 = vpop.eup %5169  ;;  %5183 = vpow2.f32 %v3538_v0  ;;  %3567 = vadd.xlane.f32.xlu0 %v3566_v34 }
 0xbb4   : > { %v6478_v52 = vpop.eup %5171  ;;  %3591 = vadd.xlane.f32.xlu1 %v3590_v20  ;;  %v3563_v30 = vsel %vm345_vm1, %v6474_v25, 0.0 }
 0xbb5   : > { %v3587_v51 = vsel %vm1214_vm13, %v6478_v52, 0.0 }
 0xbb7   : > { %v6482_v50 = vpop.eup %5173  ;;  %3564 = vadd.xlane.f32.xlu0 %v3563_v30 }
 0xbb8   : > { %v6486_v44 = vpop.eup %5175  ;;  %3588 = vadd.xlane.f32.xlu1 %v3587_v51  ;;  %v3560_v54 = vsel %vm345_vm1, %v6482_v50, 0.0  ;;  %v4222_v51 = vld [vmem:[%s6605_s4 + $0x68] sm:$0xff] }
 0xbb9   : > { %v3584_v31 = vsel %vm1214_vm13, %v6486_v44, 0.0 }
 0xbbb   : > { %v6490_v53 = vpop.eup %5177  ;;  %3561 = vadd.xlane.f32.xlu0 %v3560_v54  ;;  %v6614_v54 = vld [vmem:[#allocation3_spill] sm:$0xff] }
 0xbbc   : > { %v6494_v56 = vpop.eup %5179  ;;  %3585 = vadd.xlane.f32.xlu1 %v3584_v31  ;;  %v3557_v38 = vsel %vm345_vm1, %v6490_v53, 0.0  ;;  %v6615_v31 = vld [vmem:[#allocation2_spill] sm:$0xff] }
 0xbbd   : > { %v3581_v1 = vsel %vm1214_vm13, %v6494_v56, 0.0 }
 0xbbf   : > { %v6498_v27 = vpop.eup %5181  ;;  %3558 = vadd.xlane.f32.xlu0 %v3557_v38 }
 0xbc0   : > { %v6502_v15 = vpop.eup %5183  ;;  %3582 = vadd.xlane.f32.xlu1 %v3581_v1  ;;  %v3554_v57 = vsel %vm345_vm1, %v6498_v27, 0.0 }
 0xbc1   : > { %v3578_v14 = vsel %vm1214_vm13, %v6502_v15, 0.0 }
 0xbc3   : > { %3555 = vadd.xlane.f32.xlu0 %v3554_v57 }
 0xbc4   : > { %3579 = vadd.xlane.f32.xlu1 %v3578_v14 }
 0xc30   : > { %v3577_v63 = vpop.xlane.xlu0 %3576 }
 0xc31   : > { %v3601_v21 = vpop.xlane.xlu1 %3600 }
 0xc32   : > { %v3609_v47 = vadd.f32 %v3601_v21, %v3577_v63 }
 0xc34   : > { %5185 = vrcp.f32 %v3609_v47  ;;  %v3574_v35 = vpop.xlane.xlu0 %3573 }
 0xc35   : > { %v3598_v28 = vpop.xlane.xlu1 %3597 }
 0xc36   : > { %v3608_v41 = vadd.f32 %v3598_v28, %v3574_v35 }
 0xc38   : > { %5187 = vrcp.f32 %v3608_v41  ;;  %v3571_v8 = vpop.xlane.xlu0 %3570  ;;  %v4265_v41 = vld [vmem:[%s6606_s5 + $0x18] sm:$0xff] }
 0xc39   : > { %v3595_v6 = vpop.xlane.xlu1 %3594 }
 0xc3a   : > { %v3607_v45 = vadd.f32 %v3595_v6, %v3571_v8 }
 0xc3c   : > { %5189 = vrcp.f32 %v3607_v45  ;;  %v3568_v23 = vpop.xlane.xlu0 %3567 }
 0xc3d   : > { %v3592_v29 = vpop.xlane.xlu1 %3591 }
 0xc3e   : > { %v3606_v59 = vadd.f32 %v3592_v29, %v3568_v23 }
 0xc40   : > { %5191 = vrcp.f32 %v3606_v59  ;;  %v3565_v22 = vpop.xlane.xlu0 %3564 }
 0xc41   : > { %v5186_v55 = vpop.eup %5185  ;;  %v3589_v46 = vpop.xlane.xlu1 %3588 }
 0xc42   : > { %v3605_v62 = vadd.f32 %v3589_v46, %v3565_v22  ;;  %v3633_v3 = vmul.f32 %v5186_v55, %v6440_v10  ;;  %v3625_v42 = vmul.f32 %v5186_v55, %v6438_v24 }
 0xc44   : > { %5193 = vrcp.f32 %v3605_v62  ;;  %4935 = vmatprep.subr.msk.mxu0 %vm1214_vm13, %v3633_v3  ;;  %4957 = vmatprep.subr.msk.mxu1 %vm345_vm1, %v3625_v42  ;;  %v3562_v61 = vpop.xlane.xlu0 %3561 }
 0xc45   : > { %v5188_v4 = vpop.eup %5187  ;;  %v3586_v16 = vpop.xlane.xlu1 %3585  ;;  %4936 = vmatpush3.xpose.msk.msra.mxu0 %vm1214_vm13, %v3633_v3  ;;  %4958 = vmatpush3.xpose.msk.msra.mxu1 %vm345_vm1, %v3625_v42 }
 0xc46   : > { %v3604_v40 = vadd.f32 %v3586_v16, %v3562_v61  ;;  %v3632_v36 = vmul.f32 %v5188_v4, %v6450_v39  ;;  %v3624_v2 = vmul.f32 %v5188_v4, %v6446_v5 }
 0xc48   : > { %5195 = vrcp.f32 %v3604_v40  ;;  %4937 = vmatprep.subr.msk.mxu0 %vm1214_vm13, %v3632_v36  ;;  %4959 = vmatprep.subr.msk.mxu1 %vm345_vm1, %v3624_v2  ;;  %v3559_v24 = vpop.xlane.xlu0 %3558 }
 0xc49   : > { %v5190_v10 = vpop.eup %5189  ;;  %v3583_v13 = vpop.xlane.xlu1 %3582  ;;  %4938 = vmatpush3.xpose.msk.msra.mxu0 %vm1214_vm13, %v3632_v36  ;;  %4960 = vmatpush3.xpose.msk.msra.mxu1 %vm345_vm1, %v3624_v2 }
 0xc4a   : > { %v3603_v7 = vadd.f32 %v3583_v13, %v3559_v24  ;;  %v3631_v32 = vmul.f32 %v5190_v10, %v6460_v48  ;;  %v3623_v9 = vmul.f32 %v5190_v10, %v6456_v26 }
 0xc4c   : > { %5197 = vrcp.f32 %v3603_v7  ;;  %4939 = vmatprep.subr.msk.mxu0 %vm1214_vm13, %v3631_v32  ;;  %4961 = vmatprep.subr.msk.mxu1 %vm345_vm1, %v3623_v9  ;;  %v3556_v5 = vpop.xlane.xlu0 %3555 }
 0xc4d   : > { %v5192_v39 = vpop.eup %5191  ;;  %v3580_v37 = vpop.xlane.xlu1 %3579  ;;  %4940 = vmatpush3.xpose.msk.msra.mxu0 %vm1214_vm13, %v3631_v32  ;;  %4962 = vmatpush3.xpose.msk.msra.mxu1 %vm345_vm1, %v3623_v9 }
 0xc4e   : > { %v3602_v49 = vadd.f32 %v3580_v37, %v3556_v5  ;;  %v3630_v11 = vmul.f32 %v5192_v39, %v6470_v60  ;;  %v3622_v17 = vmul.f32 %v5192_v39, %v6466_v12 }
 0xc50   : > { %5199 = vrcp.f32 %v3602_v49  ;;  %4941 = vmatprep.subr.msk.mxu0 %vm1214_vm13, %v3630_v11  ;;  %4963 = vmatprep.subr.msk.mxu1 %vm345_vm1, %v3622_v17 }
 0xc51   : > { %v5194_v26 = vpop.eup %5193  ;;  %4942 = vmatpush3.xpose.msk.msra.mxu0 %vm1214_vm13, %v3630_v11  ;;  %4964 = vmatpush3.xpose.msk.msra.mxu1 %vm345_vm1, %v3622_v17 }
 0xc52   : > { %v3629_v48 = vmul.f32 %v5194_v26, %v6478_v52  ;;  %v3621_v43 = vmul.f32 %v5194_v26, %v6474_v25 }
 0xc54   : > { %4943 = vmatprep.subr.msk.mxu0 %vm1214_vm13, %v3629_v48  ;;  %4965 = vmatprep.subr.msk.mxu1 %vm345_vm1, %v3621_v43 }
 0xc55   : > { %v5196_v60 = vpop.eup %5195  ;;  %4944 = vmatpush3.xpose.msk.msra.mxu0 %vm1214_vm13, %v3629_v48  ;;  %4966 = vmatpush3.xpose.msk.msra.mxu1 %vm345_vm1, %v3621_v43 }
 0xc56   : > { %v3628_v12 = vmul.f32 %v5196_v60, %v6486_v44  ;;  %v3620_v0 = vmul.f32 %v5196_v60, %v6482_v50  ;;  %v4223_v44 = vld [vmem:[%s6605_s4 + $0x70] sm:$0xff] }
 0xc58   : > { %4945 = vmatprep.subr.msk.mxu0 %vm1214_vm13, %v3628_v12  ;;  %4967 = vmatprep.subr.msk.mxu1 %vm345_vm1, %v3620_v0 }
 0xc59   : > { %v5198_v34 = vpop.eup %5197  ;;  %4946 = vmatpush3.xpose.msk.msra.mxu0 %vm1214_vm13, %v3628_v12  ;;  %4968 = vmatpush3.xpose.msk.msra.mxu1 %vm345_vm1, %v3620_v0 }
 0xc5a   : > { %v3627_v25 = vmul.f32 %v5198_v34, %v6494_v56  ;;  %v3619_v20 = vmul.f32 %v5198_v34, %v6490_v53  ;;  %v4224_v53 = vld [vmem:[%s6605_s4 + $0x78] sm:$0xff]  ;;  %v5214_v56 = vmov 0  }
 0xc5b   : > { %5004 = vset.pattern.permute.xlu0 %v5214_v56 }
 0xc5c   : > { %4947 = vmatprep.subr.msk.mxu0 %vm1214_vm13, %v3627_v25  ;;  %4969 = vmatprep.subr.msk.mxu1 %vm345_vm1, %v3619_v20 }
 0xc5d   : > { %v5200_v52 = vpop.eup %5199  ;;  %4948 = vmatpush3.xpose.msk.msra.mxu0 %vm1214_vm13, %v3627_v25  ;;  %4970 = vmatpush3.xpose.msk.msra.mxu1 %vm345_vm1, %v3619_v20 }
 0xc5e   : > { %v3626_v30 = vmul.f32 %v5200_v52, %v6502_v15  ;;  %v3618_v50 = vmul.f32 %v5200_v52, %v6498_v27 }
 0xc60   : > { %4949 = vmatprep.subr.msk.mxu0 %vm1214_vm13, %v3626_v30  ;;  %4971 = vmatprep.subr.msk.mxu1 %vm345_vm1, %v3618_v50 }
 0xc61   : > { %4950 = vmatpush3.xpose.msk.msra.mxu0 %vm1214_vm13, %v3626_v30  ;;  %4972 = vmatpush3.xpose.msk.msra.mxu1 %vm345_vm1, %v3618_v50 }
 0xc62   : > { %4979 = vmatprep.subr.mxu0 %v6613_v18 }
 0xc64   : > { %4952 = vmatmul.mubr.msk.f32.vlgmr.msra.gmra.mxu0 %vm1214_vm13, %v4222_v51  ;;  %4974 = vmatmul.mubr.msk.f32.vlgmr.msra.gmra.mxu1 %vm345_vm1, %v5789_v19  ;;  %v342_v19 = vld [vmem:[%s6607_s6] sm:$0xff] }
 0xc65   : > { %4976 = vmatprep.mubr.msk.f32.mxu1 %vm345_vm1, %v6614_v54  ;;  %4954 = vmatprep.mubr.msk.f32.mxu0 %vm1214_vm13, %v4223_v44 }
 0xc66   : > { %3954 = vperm.xlu0 %5004, %v342_v19  }
 0xc68   : > { %4955 = vmatmul.mubr.msk.f32.gmra.mxu0 %vm1214_vm13, %v4224_v53  ;;  %4977 = vmatmul.mubr.msk.f32.gmra.mxu1 %vm345_vm1, %v6615_v31 }
 0xc69   : > { %4987 = vmatprep.mubr.msk.f32.mxu0 %vm5212_vm14, %v6613_v18 }
 0xce1   : > { %v3955_v6 = vpop.permute.xlu0 %3954 }
 0xd24   : > { %v4953_v38 = vpop.f32.mrf.mxu0  ;;  %v4975_v27 = vpop.f32.mrf.mxu1 }
 0xd25   : > { %v3863_v35 = vadd.f32 %v4975_v27, %v4953_v38 }
 0xd26   : > { %v3736_v1 = vpop.f32.mrf.mxu0  ;;  %v3857_v15 = vpop.f32.mrf.mxu1 }
 0xd27   : > { %v3858_v28 = vadd.f32 %v3857_v15, %v3736_v1 }
 0xd28   : > { %v4956_v57 = vpop.f32.mrf.mxu0  ;;  %v4978_v14 = vpop.f32.mrf.mxu1 }
 0xd29   : > { %v3873_v33 = vadd.f32 %v4978_v14, %v4956_v57 }
 0xd2a   : > { %v3746_v63 = vpop.f32.mrf.mxu0  ;;  %v3867_v21 = vpop.f32.mrf.mxu1 }
 0xd2b   : > { %v3868_v47 = vadd.f32 %v3867_v21, %v3746_v63  ;;  %4980 = vmatpush3.msra.mxu0 %v3873_v33 }
 0xd2c   : > { %4981 = vmatprep.subr.mxu0 %v6613_v18 }
 0xd2d   : > { %4982 = vmatpush3.msra.mxu0 %v3868_v47 }
 0xd2e   : > { %4983 = vmatprep.subr.mxu0 %v6613_v18 }
 0xd2f   : > { %4984 = vmatpush3.msra.mxu0 %v3863_v35 }
 0xd30   : > { %4985 = vmatprep.subr.mxu0 %v6613_v18 }
 0xd31   : > { %4986 = vmatpush3.msra.mxu0 %v3858_v28 }
 0xd32   : > { %4988 = vmatmul.mubr.msk.f32.vlgmr.msra.gmra.mxu0 %vm955_vm12, %v4265_v41 }
 0xdf2   : > { %v3947_v8 = vpop.f32.mrf.mxu0 }
 0xdf3   : > { %v3951_v45 = vadd.f32 %v3947_v8, %v6394_v58 }
 0xdf4   : > { %v4989_v23 = vpop.f32.mrf.mxu0 }
 0xdf5   : > { %v3957_v29 = vadd.f32 %v3955_v6, %v3951_v45 }
 0xdf7   : > { %3958 = vst.msk [vmem:[%s273_s12] sm:$0xff] %vm345_vm1, %v3957_v29 }
 0xdf8 PF: > { %s17_s24 = sadd.s32 1, %s5207_s24  }
 0xdf9   : > { %p14_p4 = scmp.ge.s32.totalorder %s17_s24, 4  }
 0xdfb   :  { %16 = sbr.rel (!%p14_p4) target bundleno = 1 (0x1), region = 87 }

</bundles_post_ra>
